<compile_context>
chip_gen: v5e
topology: v5e:2x2
jax: 0.10.0
libtpu: 0.0.40
codegen_flags: <defaults>
</compile_context>

<pallas_src>
import functools

import numpy as np
import jax
import jax.numpy as jnp
from jax import lax
from jax.experimental import pallas as pl
from jax.experimental.pallas import tpu as pltpu


def _dot(p, q):
    """p @ q with f32 accumulation on the MXU (bf16 operands)."""
    return lax.dot_general(p, q, (((1,), (0,)), ((), ())),
                           preferred_element_type=jnp.float32)


def _swapneg(t, n):
    """[a | b] -> [-b | a]  (multiply-by-i in the lane-packed complex slab)."""
    return jnp.concatenate([-t[:, n:], t[:, :n]], axis=1)


def _proptf_kernel(ar, ai, wa, br, bi, wb, hr, hi, x_ref, o_ref):
    """Per-field body:  out = B @ (H * (A @ u1 @ A^T)) @ B^T  (packed real form)."""
    n = ar.shape[0]
    x = x_ref[0]                                     # (N, 2N) bf16 = [Re u1 | Im u1]

    # Stage 1 columns: T = A @ u1   ==  Ar @ X + swapneg(Ai @ X)
    t = _dot(ar[...], x) + _swapneg(_dot(ai[...], x), n)
    # Stage 1 rows:    T = T @ A^T  (single matmul against block matrix WA)
    t = _dot(t.astype(jnp.bfloat16), wa[...])

    # U2 = H * U1  (elementwise complex multiply in f32 on the VPU)
    t = hr[...] * t + _swapneg(hi[...] * t, n)

    # Stage 2 columns: T = B @ U2
    tb = t.astype(jnp.bfloat16)
    t = _dot(br[...], tb) + _swapneg(_dot(bi[...], tb), n)
    # Stage 2 rows:    u2 = T @ B^T
    o_ref[0] = _dot(t.astype(jnp.bfloat16), wb[...])


@functools.lru_cache(maxsize=8)
def _transform_planes(n, dtype_name):
    """Host-precomputed transform operands (cached per size / operand dtype)."""
    k = np.arange(n)
    F = np.exp(-2j * np.pi * np.outer(k, k) / n)          # forward DFT matrix
    Finv = np.conj(F) / n                                  # inverse DFT matrix
    P = np.eye(n)[np.fft.fftshift(k)]                      # P    @ x == fftshift(x)
    Pinv = np.eye(n)[np.fft.ifftshift(k)]                  # Pinv @ x == ifftshift(x)
    A = F @ P                                              # A @ u @ A^T == fft2(fftshift(u))
    B = Pinv @ Finv                                        # B @ U @ B^T == ifftshift(ifft2(U))

    def block_t(m):
        # [tr | ti] @ block_t(M)  ==  packed form of  (tr + i ti) @ M^T
        return np.block([[m.real.T, m.imag.T], [-m.imag.T, m.real.T]])

    to = lambda a: jnp.asarray(a, dtype=dtype_name)
    return (to(A.real), to(A.imag), to(block_t(A)),
            to(B.real), to(B.imag), to(block_t(B)))


def make_prop_tf(H, *, operand_dtype=jnp.bfloat16):
    """Build forward(u1) implementing PropTF(H).forward for 2-D complex fields.

    u1 may be (N, N) or batched (B, N, N); the 2-D propagation is applied to
    each field independently (the batch axis is purely a throughput axis).
    """
    H = jnp.asarray(H)
    n = H.shape[-1]
    assert H.shape == (n, n), f"H must be square 2-D, got {H.shape}"
    op_dtype = jax.dtypes.canonicalize_dtype(operand_dtype)
    dtype_name = op_dtype.name
    op_bytes = op_dtype.itemsize

    # Fixed module parameter -> split / slab-pack H once (not per forward call).
    hr = jnp.real(H).astype(jnp.float32)
    hi = jnp.imag(H).astype(jnp.float32)
    hr_s = jnp.concatenate([hr, hr], axis=-1)               # (N, 2N) f32
    hi_s = jnp.concatenate([hi, hi], axis=-1)
    ar, ai, wa, br, bi, wb = _transform_planes(n, dtype_name)

    def forward(u1):
        u1 = jnp.asarray(u1)
        squeeze = (u1.ndim == 2)
        if squeeze:
            u1 = u1[None]
        b = u1.shape[0]
        assert u1.shape[1:] == (n, n), f"u1 spatial shape {u1.shape[1:]} != {(n, n)}"

        # Lane-packed bf16 input slab [Re | Im], (B, N, 2N).
        x = jnp.concatenate([jnp.real(u1), jnp.imag(u1)], axis=-1).astype(op_dtype)

        # 6 real matmuls per field: 2x (N,N,2N) + 1x (N,2N,2N) per stage.
        flops = b * 32 * n ** 3
        const_bytes = (4 * n * n + 2 * (2 * n) * (2 * n)) * op_bytes \
            + 2 * n * (2 * n) * 4
        io_bytes_per_field = n * 2 * n * op_bytes + n * 2 * n * 4
        bytes_accessed = const_bytes + b * io_bytes_per_field
        # Resident constants + double-buffered field i/o + headroom for the
        # in-kernel f32 temporaries; clamp at 48 MiB so v7x (64 MiB/TC) keeps
        # headroom for compiler-internal scratch.
        scratch_guess = 8 * n * 2 * n * 4
        vmem_limit = int(min(max(2 * (const_bytes + 2 * io_bytes_per_field
                                      + scratch_guess), 32 << 20), 48 << 20))

        out = pl.pallas_call(
            _proptf_kernel,
            out_shape=jax.ShapeDtypeStruct((b, n, 2 * n), jnp.float32),
            grid=(b,),
            in_specs=[
                pl.BlockSpec((n, n), lambda i: (0, 0)),            # Ar   (resident)
                pl.BlockSpec((n, n), lambda i: (0, 0)),            # Ai
                pl.BlockSpec((2 * n, 2 * n), lambda i: (0, 0)),    # WA
                pl.BlockSpec((n, n), lambda i: (0, 0)),            # Br
                pl.BlockSpec((n, n), lambda i: (0, 0)),            # Bi
                pl.BlockSpec((2 * n, 2 * n), lambda i: (0, 0)),    # WB
                pl.BlockSpec((n, 2 * n), lambda i: (0, 0)),        # Hr slab
                pl.BlockSpec((n, 2 * n), lambda i: (0, 0)),        # Hi slab
                pl.BlockSpec((1, n, 2 * n), lambda i: (i, 0, 0)),  # u1 slab (batched)
            ],
            out_specs=pl.BlockSpec((1, n, 2 * n), lambda i: (i, 0, 0)),
            compiler_params=pltpu.CompilerParams(
                dimension_semantics=("parallel",),
                vmem_limit_bytes=vmem_limit),
            cost_estimate=pl.CostEstimate(flops=flops, transcendentals=0,
                                          bytes_accessed=bytes_accessed),
        )(ar, ai, wa, br, bi, wb, hr_s, hi_s, x)

        u2 = lax.complex(out[..., :n], out[..., n:])
        return u2[0] if squeeze else u2

    return jax.jit(forward)


if __name__ == "__main__":
    N, B = 128, 4                      # lane-dense / MXU-aligned demo size
    key = jax.random.PRNGKey(0)
    k1, k2 = jax.random.split(key)

    # Deterministic batch of complex input fields.
    u1 = (jax.random.normal(k1, (B, N, N), jnp.float32)
          + 1j * jax.random.normal(k2, (B, N, N), jnp.float32)).astype(jnp.complex64)

    # Deterministic transfer function H (Fresnel-like quadratic phase),
    # playing the role of the precomputed self.H parameter of PropTF.
    fx = jnp.fft.fftfreq(N).astype(jnp.float32)
    FX, FY = jnp.meshgrid(fx, fx, indexing="xy")
    H = jnp.exp(-1j * jnp.pi * 4.0 * (FX ** 2 + FY ** 2)).astype(jnp.complex64)

    prop = make_prop_tf(H)
    u2 = jax.block_until_ready(prop(u1))

    # Reference: exact PropTF.forward semantics applied per 2-D field.
    ref = jnp.fft.ifftshift(
        jnp.fft.ifft2(H * jnp.fft.fft2(jnp.fft.fftshift(u1, axes=(-2, -1)))),
        axes=(-2, -1))

    # bf16 operands / f32 accumulation: expected relative L2 error ~1e-2.
    rel = float(jnp.linalg.norm(u2 - ref) / jnp.linalg.norm(ref))
    assert rel < 4e-2, f"relative L2 error = {rel}"

    # Single-field (2-D) path matches the original module signature too.
    u2_single = jax.block_until_ready(prop(u1[0]))
    rel1 = float(jnp.linalg.norm(u2_single - ref[0]) / jnp.linalg.norm(ref[0]))
    assert rel1 < 4e-2, f"relative L2 error (2-D path) = {rel1}"

    print("KERNEL_OK")
</pallas_src>

<mosaic_0001>
module attributes {stable_mosaic.version = 11 : i64} {
  func.func @_proptf_kernel(%arg0: i32, %arg1: memref<128x128xbf16, #tpu.memory_space<vmem>>, %arg2: memref<128x128xbf16, #tpu.memory_space<vmem>>, %arg3: memref<256x256xbf16, #tpu.memory_space<vmem>>, %arg4: memref<128x128xbf16, #tpu.memory_space<vmem>>, %arg5: memref<128x128xbf16, #tpu.memory_space<vmem>>, %arg6: memref<256x256xbf16, #tpu.memory_space<vmem>>, %arg7: memref<128x256xf32, #tpu.memory_space<vmem>>, %arg8: memref<128x256xf32, #tpu.memory_space<vmem>>, %arg9: memref<1x128x256xbf16, #tpu.memory_space<vmem>>, %arg10: memref<1x128x256xf32, #tpu.memory_space<vmem>>) attributes {dimension_semantics = [#tpu.dimension_semantics<parallel>], iteration_bounds = array<i64: 4>, scalar_prefetch = 0 : i64, scratch_operands = 0 : i64, tpu.core_type = #tpu.core_type<tc>, window_params = [{pipeline_mode = #tpu.pipeline_mode<synchronous>, transform_indices = @transform_0, window_bounds = array<i64: 128, 128>}, {pipeline_mode = #tpu.pipeline_mode<synchronous>, transform_indices = @transform_1, window_bounds = array<i64: 128, 128>}, {pipeline_mode = #tpu.pipeline_mode<synchronous>, transform_indices = @transform_2, window_bounds = array<i64: 256, 256>}, {pipeline_mode = #tpu.pipeline_mode<synchronous>, transform_indices = @transform_3, window_bounds = array<i64: 128, 128>}, {pipeline_mode = #tpu.pipeline_mode<synchronous>, transform_indices = @transform_4, window_bounds = array<i64: 128, 128>}, {pipeline_mode = #tpu.pipeline_mode<synchronous>, transform_indices = @transform_5, window_bounds = array<i64: 256, 256>}, {pipeline_mode = #tpu.pipeline_mode<synchronous>, transform_indices = @transform_6, window_bounds = array<i64: 128, 256>}, {pipeline_mode = #tpu.pipeline_mode<synchronous>, transform_indices = @transform_7, window_bounds = array<i64: 128, 256>}, {transform_indices = @transform_8, window_bounds = array<i64: 1, 128, 256>}, {transform_indices = @transform_9, window_bounds = array<i64: 1, 128, 256>}]} {
    %c0 = arith.constant 0 : index
    %c0_0 = arith.constant 0 : index
    %c0_1 = arith.constant 0 : index
    %0 = vector.load %arg9[%c0, %c0_0, %c0_1] : memref<1x128x256xbf16, #tpu.memory_space<vmem>>, vector<1x128x256xbf16>
    %1 = vector.shape_cast %0 : vector<1x128x256xbf16> to vector<128x256xbf16>
    %c0_2 = arith.constant 0 : index
    %c0_3 = arith.constant 0 : index
    %2 = vector.load %arg1[%c0_2, %c0_3] : memref<128x128xbf16, #tpu.memory_space<vmem>>, vector<128x128xbf16>
    %cst = arith.constant dense<0.000000e+00> : vector<128x256xf32>
    %3 = tpu.matmul %2, %1, %cst {dimension_numbers = #tpu.dot_dimension_numbers<[1], [0], [0], [1], [0, 0, 1, 1], [], []>} : vector<128x128xbf16>, vector<128x256xbf16>, vector<128x256xf32> -> vector<128x256xf32>
    %c0_4 = arith.constant 0 : index
    %c0_5 = arith.constant 0 : index
    %4 = vector.load %arg2[%c0_4, %c0_5] : memref<128x128xbf16, #tpu.memory_space<vmem>>, vector<128x128xbf16>
    %cst_6 = arith.constant dense<0.000000e+00> : vector<128x256xf32>
    %5 = tpu.matmul %4, %1, %cst_6 {dimension_numbers = #tpu.dot_dimension_numbers<[1], [0], [0], [1], [0, 0, 1, 1], [], []>} : vector<128x128xbf16>, vector<128x256xbf16>, vector<128x256xf32> -> vector<128x256xf32>
    %6 = vector.extract_strided_slice %5 {offsets = [0, 128], sizes = [128, 128], strides = [1, 1]} : vector<128x256xf32> to vector<128x128xf32>
    %cst_7 = arith.constant 0.000000e+00 : f32
    %7 = vector.broadcast %cst_7 : f32 to vector<128x128xf32>
    %8 = arith.subf %7, %6 : vector<128x128xf32>
    %9 = vector.extract_strided_slice %5 {offsets = [0, 0], sizes = [128, 128], strides = [1, 1]} : vector<128x256xf32> to vector<128x128xf32>
    %10 = tpu.concatenate %8, %9 in 1 : vector<128x128xf32>, vector<128x128xf32> -> vector<128x256xf32>
    %11 = arith.addf %3, %10 : vector<128x256xf32>
    %12 = arith.truncf %11 : vector<128x256xf32> to vector<128x256xbf16>
    %c0_8 = arith.constant 0 : index
    %c0_9 = arith.constant 0 : index
    %13 = vector.load %arg3[%c0_8, %c0_9] : memref<256x256xbf16, #tpu.memory_space<vmem>>, vector<256x256xbf16>
    %cst_10 = arith.constant dense<0.000000e+00> : vector<128x256xf32>
    %14 = tpu.matmul %12, %13, %cst_10 {dimension_numbers = #tpu.dot_dimension_numbers<[1], [0], [0], [1], [0, 0, 1, 1], [], []>} : vector<128x256xbf16>, vector<256x256xbf16>, vector<128x256xf32> -> vector<128x256xf32>
    %c0_11 = arith.constant 0 : index
    %c0_12 = arith.constant 0 : index
    %15 = vector.load %arg7[%c0_11, %c0_12] : memref<128x256xf32, #tpu.memory_space<vmem>>, vector<128x256xf32>
    %16 = arith.mulf %15, %14 : vector<128x256xf32>
    %c0_13 = arith.constant 0 : index
    %c0_14 = arith.constant 0 : index
    %17 = vector.load %arg8[%c0_13, %c0_14] : memref<128x256xf32, #tpu.memory_space<vmem>>, vector<128x256xf32>
    %18 = arith.mulf %17, %14 : vector<128x256xf32>
    %19 = vector.extract_strided_slice %18 {offsets = [0, 128], sizes = [128, 128], strides = [1, 1]} : vector<128x256xf32> to vector<128x128xf32>
    %cst_15 = arith.constant 0.000000e+00 : f32
    %20 = vector.broadcast %cst_15 : f32 to vector<128x128xf32>
    %21 = arith.subf %20, %19 : vector<128x128xf32>
    %22 = vector.extract_strided_slice %18 {offsets = [0, 0], sizes = [128, 128], strides = [1, 1]} : vector<128x256xf32> to vector<128x128xf32>
    %23 = tpu.concatenate %21, %22 in 1 : vector<128x128xf32>, vector<128x128xf32> -> vector<128x256xf32>
    %24 = arith.addf %16, %23 : vector<128x256xf32>
    %25 = arith.truncf %24 : vector<128x256xf32> to vector<128x256xbf16>
    %c0_16 = arith.constant 0 : index
    %c0_17 = arith.constant 0 : index
    %26 = vector.load %arg4[%c0_16, %c0_17] : memref<128x128xbf16, #tpu.memory_space<vmem>>, vector<128x128xbf16>
    %cst_18 = arith.constant dense<0.000000e+00> : vector<128x256xf32>
    %27 = tpu.matmul %26, %25, %cst_18 {dimension_numbers = #tpu.dot_dimension_numbers<[1], [0], [0], [1], [0, 0, 1, 1], [], []>} : vector<128x128xbf16>, vector<128x256xbf16>, vector<128x256xf32> -> vector<128x256xf32>
    %c0_19 = arith.constant 0 : index
    %c0_20 = arith.constant 0 : index
    %28 = vector.load %arg5[%c0_19, %c0_20] : memref<128x128xbf16, #tpu.memory_space<vmem>>, vector<128x128xbf16>
    %cst_21 = arith.constant dense<0.000000e+00> : vector<128x256xf32>
    %29 = tpu.matmul %28, %25, %cst_21 {dimension_numbers = #tpu.dot_dimension_numbers<[1], [0], [0], [1], [0, 0, 1, 1], [], []>} : vector<128x128xbf16>, vector<128x256xbf16>, vector<128x256xf32> -> vector<128x256xf32>
    %30 = vector.extract_strided_slice %29 {offsets = [0, 128], sizes = [128, 128], strides = [1, 1]} : vector<128x256xf32> to vector<128x128xf32>
    %cst_22 = arith.constant 0.000000e+00 : f32
    %31 = vector.broadcast %cst_22 : f32 to vector<128x128xf32>
    %32 = arith.subf %31, %30 : vector<128x128xf32>
    %33 = vector.extract_strided_slice %29 {offsets = [0, 0], sizes = [128, 128], strides = [1, 1]} : vector<128x256xf32> to vector<128x128xf32>
    %34 = tpu.concatenate %32, %33 in 1 : vector<128x128xf32>, vector<128x128xf32> -> vector<128x256xf32>
    %35 = arith.addf %27, %34 : vector<128x256xf32>
    %36 = arith.truncf %35 : vector<128x256xf32> to vector<128x256xbf16>
    %c0_23 = arith.constant 0 : index
    %c0_24 = arith.constant 0 : index
    %37 = vector.load %arg6[%c0_23, %c0_24] : memref<256x256xbf16, #tpu.memory_space<vmem>>, vector<256x256xbf16>
    %cst_25 = arith.constant dense<0.000000e+00> : vector<128x256xf32>
    %38 = tpu.matmul %36, %37, %cst_25 {dimension_numbers = #tpu.dot_dimension_numbers<[1], [0], [0], [1], [0, 0, 1, 1], [], []>} : vector<128x256xbf16>, vector<256x256xbf16>, vector<128x256xf32> -> vector<128x256xf32>
    %c0_26 = arith.constant 0 : index
    %c0_27 = arith.constant 0 : index
    %c0_28 = arith.constant 0 : index
    %39 = vector.load %arg10[%c0_26, %c0_27, %c0_28] : memref<1x128x256xf32, #tpu.memory_space<vmem>>, vector<1x128x256xf32>
    %40 = vector.shape_cast %39 : vector<1x128x256xf32> to vector<128x256xf32>
    %41 = vector.shape_cast %38 : vector<128x256xf32> to vector<1x128x256xf32>
    tpu.vector_store %arg10[%c0_26, %c0_27, %c0_28], %41 {strides = array<i32>} : memref<1x128x256xf32, #tpu.memory_space<vmem>>, vector<1x128x256xf32>,
    return
  }
  func.func @transform_0(%arg0: i32) -> (i32, i32) {
    %c0_i32 = arith.constant 0 : i32
    %c0_i32_0 = arith.constant 0 : i32
    %c0_i32_1 = arith.constant 0 : i32
    return %c0_i32, %c0_i32_0 : i32, i32
  }
  func.func @transform_1(%arg0: i32) -> (i32, i32) {
    %c0_i32 = arith.constant 0 : i32
    %c0_i32_0 = arith.constant 0 : i32
    %c0_i32_1 = arith.constant 0 : i32
    return %c0_i32, %c0_i32_0 : i32, i32
  }
  func.func @transform_2(%arg0: i32) -> (i32, i32) {
    %c0_i32 = arith.constant 0 : i32
    %c0_i32_0 = arith.constant 0 : i32
    %c0_i32_1 = arith.constant 0 : i32
    return %c0_i32, %c0_i32_0 : i32, i32
  }
  func.func @transform_3(%arg0: i32) -> (i32, i32) {
    %c0_i32 = arith.constant 0 : i32
    %c0_i32_0 = arith.constant 0 : i32
    %c0_i32_1 = arith.constant 0 : i32
    return %c0_i32, %c0_i32_0 : i32, i32
  }
  func.func @transform_4(%arg0: i32) -> (i32, i32) {
    %c0_i32 = arith.constant 0 : i32
    %c0_i32_0 = arith.constant 0 : i32
    %c0_i32_1 = arith.constant 0 : i32
    return %c0_i32, %c0_i32_0 : i32, i32
  }
  func.func @transform_5(%arg0: i32) -> (i32, i32) {
    %c0_i32 = arith.constant 0 : i32
    %c0_i32_0 = arith.constant 0 : i32
    %c0_i32_1 = arith.constant 0 : i32
    return %c0_i32, %c0_i32_0 : i32, i32
  }
  func.func @transform_6(%arg0: i32) -> (i32, i32) {
    %c0_i32 = arith.constant 0 : i32
    %c0_i32_0 = arith.constant 0 : i32
    %c0_i32_1 = arith.constant 0 : i32
    return %c0_i32, %c0_i32_0 : i32, i32
  }
  func.func @transform_7(%arg0: i32) -> (i32, i32) {
    %c0_i32 = arith.constant 0 : i32
    %c0_i32_0 = arith.constant 0 : i32
    %c0_i32_1 = arith.constant 0 : i32
    return %c0_i32, %c0_i32_0 : i32, i32
  }
  func.func @transform_8(%arg0: i32) -> (i32, i32, i32) {
    %c0_i32 = arith.constant 0 : i32
    %c0_i32_0 = arith.constant 0 : i32
    %c0_i32_1 = arith.constant 0 : i32
    return %arg0, %c0_i32, %c0_i32_0 : i32, i32, i32
  }
  func.func @transform_9(%arg0: i32) -> (i32, i32, i32) {
    %c0_i32 = arith.constant 0 : i32
    %c0_i32_0 = arith.constant 0 : i32
    %c0_i32_1 = arith.constant 0 : i32
    return %arg0, %c0_i32, %c0_i32_0 : i32, i32, i32
  }
}

</mosaic_0001>

<bundles_post_ra>
// kernel: custom-call
= control target key start
LH: loop header
LB: loop body
LE: loop exit
PB: predicated region body
PF: predicated region fallthrough
CT: control target
= control target key end

     0   :  { %2 = vsyncpa [#allocation0], 0  ;;  %s55_s0 = inlined_call_operand.hbm [shape: c64[4,128,128], index: 0, kind: input, shape index: {}]   ;;  %s56_s1 = inlined_call_operand.vmem [shape: f32[4,128,128], index: 1, kind: output, shape index: {}]  }
   0x1   :  { %s4_s8 = sshll.u32 %s55_s0, 4  ;;  %s6_s11 = sshll.u32 %s56_s1, 4  ;;  %s5_s8 = int_to_ptr.hbm [resolvable:$true] %s4_s8  ;;  %s7_s11 = int_to_ptr.vmem [resolvable:$true] %s6_s11 }
   0x2   :  { %9 = dma.hbm_to_vmem [thread:$0]  %s5_s8, 8192, %s7_s11, [#allocation0] }
   0x3   :  { %37 = dma.done.wait [#allocation0], 8192  }
   0x4   :  { %38 = vsyncadd [#allocation0], 4294959104 }
   0x5   :  { %12 = vsyncpa [#allocation0], 1 }

// kernel: custom-call.1
= control target key start
LH: loop header
LB: loop body
LE: loop exit
PB: predicated region body
PF: predicated region fallthrough
CT: control target
= control target key end

     0   :  { %s56_s0 = inlined_call_operand.hbm [shape: c64[4,128,128], index: 0, kind: input, shape index: {}]   ;;  %s57_s1 = inlined_call_operand.vmem [shape: f32[4,128,128], index: 1, kind: output, shape index: {}]  }
   0x1   :  { %s2_s8 = scalar_lea.hbm %s56_s0, 512 }
   0x2   :  { %3 = vsyncpa [#allocation0], 0  ;;  %s5_s9 = sshll.u32 %s2_s8, 4  ;;  %s7_s12 = sshll.u32 %s57_s1, 4  ;;  %s6_s9 = int_to_ptr.hbm [resolvable:$true] %s5_s9  ;;  %s8_s12 = int_to_ptr.vmem [resolvable:$true] %s7_s12 }
   0x3   :  { %10 = dma.hbm_to_vmem [thread:$0]  %s6_s9, 8192, %s8_s12, [#allocation0] }
   0x4   :  { %38 = dma.done.wait [#allocation0], 8192  }
   0x5   :  { %39 = vsyncadd [#allocation0], 4294959104 }
   0x6   :  { %13 = vsyncpa [#allocation0], 1 }

// kernel: custom-call.2
= control target key start
LH: loop header
LB: loop body
LE: loop exit
PB: predicated region body
PF: predicated region fallthrough
CT: control target
= control target key end

     0   :  { %s105_s0 = inlined_call_operand.vmem [shape: f32[4,128,128], index: 0, kind: input, shape index: {}]   ;;  %s106_s1 = inlined_call_operand.vmem [shape: f32[4,128,128], index: 1, kind: input, shape index: {}]   ;;  %s107_s2 = inlined_call_operand.hbm [shape: c64[4,128,128], index: 2, kind: output, shape index: {}]  }
   0x1   :  { %s3_s11 = scalar_lea.hbm %s107_s2, 512 }
   0x2   :  { %4 = vsyncpa [#allocation0], 0  ;;  %s6_s14 = sshll.u32 %s105_s0, 4  ;;  %s8_s17 = sshll.u32 %s107_s2, 4  ;;  %s7_s14 = int_to_ptr.vmem [resolvable:$true] %s6_s14  ;;  %s9_s17 = int_to_ptr.hbm [resolvable:$true] %s8_s17 }
   0x3   :  { %11 = dma.vmem_to_hbm [thread:$0]  %s7_s14, 8192, %s9_s17, [#allocation0] }
   0x4   :  { %74 = dma.done.wait [#allocation0], 8192  }
   0x5   :  { %75 = vsyncadd [#allocation0], 4294959104 }
   0x6   :  { %14 = vsyncpa [#allocation0], 1 }
   0x7   :  { %15 = vsyncpa [#allocation1], 0  ;;  %s17_s20 = sshll.u32 %s106_s1, 4  ;;  %s19_s21 = sshll.u32 %s3_s11, 4  ;;  %s18_s20 = int_to_ptr.vmem [resolvable:$true] %s17_s20  ;;  %s20_s21 = int_to_ptr.hbm [resolvable:$true] %s19_s21 }
   0x8   :  { %22 = dma.vmem_to_hbm [thread:$0]  %s18_s20, 8192, %s20_s21, [#allocation1] }
   0x9   :  { %76 = dma.done.wait [#allocation1], 8192  }
   0xa   :  { %77 = vsyncadd [#allocation1], 4294959104 }
   0xb   :  { %25 = vsyncpa [#allocation1], 1 }

// kernel: forward.1
= control target key start
LH: loop header
LB: loop body
LE: loop exit
PB: predicated region body
PF: predicated region fallthrough
CT: control target
= control target key end

     0   :  { %s2835_s30 = smov 0   ;;  %s3694_s0 = inlined_call_operand.vmem [shape: bf16[128,128], index: 0, kind: input, shape index: {}]   ;;  %s3695_s1 = inlined_call_operand.vmem [shape: bf16[128,128], index: 1, kind: input, shape index: {}]   ;;  %s3696_s2 = inlined_call_operand.vmem [shape: bf16[256,256], index: 2, kind: input, shape index: {}]   ;;  %s3697_s3 = inlined_call_operand.vmem [shape: bf16[128,128], index: 3, kind: input, shape index: {}]   ;;  %s3698_s4 = inlined_call_operand.vmem [shape: bf16[128,128], index: 4, kind: input, shape index: {}]   ;;  %s3699_s5 = inlined_call_operand.vmem [shape: bf16[256,256], index: 5, kind: input, shape index: {}]   ;;  %s3700_s6 = inlined_call_operand.vmem [shape: f32[128,256], index: 6, kind: input, shape index: {}]   ;;  %s3701_s7 = inlined_call_operand.vmem [shape: f32[128,256], index: 7, kind: input, shape index: {}]   ;;  %s3702_s8 = inlined_call_operand.vmem [shape: bf16[4,128,256], index: 8, kind: input, shape index: {}]   ;;  %s3703_s9 = inlined_call_operand.vmem [shape: f32[4,128,256], index: 9, kind: output, shape index: {}]  }
   0x1 LB: > { %s2196_s10 = sadd.s32 4294967295, %s2783_s30   ;;  %p2200_p0 = scmp.ge.s32.totalorder %s2783_s30, 1  ;;  %s2783_s30 = sphi %s2835_s30, %s19_s30  }
   0x2   : > { %p287_p1 = scmp.lt.s32.totalorder %s2783_s30, 5 }
   0x4   : > { %p288_p2 = pnand %p2200_p0, %p287_p1 }
   0x6   : > { %291 = sbr.rel (%p288_p2) target bundleno = 887 (0x377), region = 56 }
   0xb   : > { %p323_p3 = scmp.lt.s32.totalorder %s2196_s10, 3  ;;  %v2681_v48 = vld [vmem:[%s3695_s1] sm:$0xff]  ;;  %v2682_v50 = vld [vmem:[%s3695_s1 + $0x8] sm:$0xff]  ;;  %v2683_v52 = vld [vmem:[%s3695_s1 + $0x10] sm:$0xff] }
   0xc   : > { %v2673_v49 = vld [vmem:[%s3694_s0] sm:$0xff]  ;;  %v2674_v51 = vld [vmem:[%s3694_s0 + $0x8] sm:$0xff]  ;;  %v2675_v53 = vld [vmem:[%s3694_s0 + $0x10] sm:$0xff] }
   0xd   : > { %s3711_s10 = smov (!%p323_p3, %s2196_s10), 3  ;;  %v2684_v54 = vld [vmem:[%s3695_s1 + $0x18] sm:$0xff]  ;;  %v2685_v56 = vld [vmem:[%s3695_s1 + $0x20] sm:$0xff]  ;;  %v2686_v58 = vld [vmem:[%s3695_s1 + $0x28] sm:$0xff] }
   0xe   : > { %s2655_s11 = sshll.u32 %s3711_s10, 7  ;;  %v2676_v55 = vld [vmem:[%s3694_s0 + $0x18] sm:$0xff]  ;;  %v2677_v57 = vld [vmem:[%s3694_s0 + $0x20] sm:$0xff]  ;;  %v2678_v59 = vld [vmem:[%s3694_s0 + $0x28] sm:$0xff]  ;;  %s2656_s26 = sshll.u32 %s3711_s10, 8 }
   0xf   : > { %s2849_s14 = scalar_lea.vmem %s3702_s8, %s2655_s11  ;;  %v2391_v60 = vld [vmem:[%s3696_s2 + $0x70] sm:$0xf]  ;;  %v2704_v61 = vld [vmem:[%s3696_s2 + $0x74] sm:$0xf0]  ;;  %s3657_s29 = scalar_lea.vmem %s3703_s9, %s2656_s26 }
  0x10   : > { %v2295_v0 = vld [vmem:[%s2849_s14 + $0x70] sm:$0xf]  ;;  %v2672_v1 = vld [vmem:[%s2849_s14 + $0x74] sm:$0xf0]  ;;  %v2671_v2 = vld [vmem:[%s2849_s14 + $0x74] sm:$0xf]  ;;  %v2392_v62 = vor.u32 %v2704_v61, %v2391_v60 }
  0x11   : > { %v2296_v3 = vor.u32 %v2672_v1, %v2295_v0  ;;  %v2297_v4 = vld [vmem:[%s2849_s14 + $0x78] sm:$0xf0]  ;;  %v2287_v5 = vld [vmem:[%s2849_s14 + $0x60] sm:$0xf]  ;;  %v2670_v6 = vld [vmem:[%s2849_s14 + $0x64] sm:$0xf0] }
  0x12   : > { %v2300_v7 = vor.u32 %v2671_v2, %v2297_v4  ;;  %v2669_v8 = vld [vmem:[%s2849_s14 + $0x64] sm:$0xf]  ;;  %v2289_v9 = vld [vmem:[%s2849_s14 + $0x68] sm:$0xf0]  ;;  %v2288_v10 = vor.u32 %v2670_v6, %v2287_v5  ;;  %v2279_v12 = vld [vmem:[%s2849_s14 + $0x50] sm:$0xf] }
  0x13   : > { %509 = vmatpush.bf16.msra.mxu0 %v2296_v3  ;;  %671 = vmatpush.bf16.msra.mxu2 %v2296_v3  ;;  %v2292_v11 = vor.u32 %v2669_v8, %v2289_v9  ;;  %v2668_v13 = vld [vmem:[%s2849_s14 + $0x54] sm:$0xf0]  ;;  %v2667_v14 = vld [vmem:[%s2849_s14 + $0x54] sm:$0xf]  ;;  %v2281_v15 = vld [vmem:[%s2849_s14 + $0x58] sm:$0xf0] }
  0x14   : > { %558 = vmatpush.bf16.msra.mxu1 %v2300_v7  ;;  %720 = vmatpush.bf16.msra.mxu3 %v2300_v7  ;;  %v2280_v16 = vor.u32 %v2668_v13, %v2279_v12  ;;  %v2284_v17 = vor.u32 %v2667_v14, %v2281_v15  ;;  %v2271_v18 = vld [vmem:[%s2849_s14 + $0x40] sm:$0xf]  ;;  %v2666_v19 = vld [vmem:[%s2849_s14 + $0x44] sm:$0xf0]  ;;  %v2665_v20 = vld [vmem:[%s2849_s14 + $0x44] sm:$0xf] }
  0x15   : > { %v2273_v21 = vld [vmem:[%s2849_s14 + $0x48] sm:$0xf0]  ;;  %v2272_v22 = vor.u32 %v2666_v19, %v2271_v18  ;;  %v2263_v24 = vld [vmem:[%s2849_s14 + $0x30] sm:$0xf]  ;;  %v2664_v25 = vld [vmem:[%s2849_s14 + $0x34] sm:$0xf0] }
  0x16   : > { %v2276_v23 = vor.u32 %v2665_v20, %v2273_v21  ;;  %v2663_v26 = vld [vmem:[%s2849_s14 + $0x34] sm:$0xf]  ;;  %v2265_v27 = vld [vmem:[%s2849_s14 + $0x38] sm:$0xf0]  ;;  %v2264_v28 = vor.u32 %v2664_v25, %v2263_v24  ;;  %v2255_v30 = vld [vmem:[%s2849_s14 + $0x20] sm:$0xf] }
  0x17   : > { %510 = vmatpush.bf16.msra.mxu0 %v2288_v10  ;;  %672 = vmatpush.bf16.msra.mxu2 %v2288_v10  ;;  %v2268_v29 = vor.u32 %v2663_v26, %v2265_v27  ;;  %v2662_v31 = vld [vmem:[%s2849_s14 + $0x24] sm:$0xf0]  ;;  %v2661_v32 = vld [vmem:[%s2849_s14 + $0x24] sm:$0xf]  ;;  %v2257_v33 = vld [vmem:[%s2849_s14 + $0x28] sm:$0xf0] }
  0x18   : > { %559 = vmatpush.bf16.msra.mxu1 %v2292_v11  ;;  %721 = vmatpush.bf16.msra.mxu3 %v2292_v11  ;;  %v2256_v34 = vor.u32 %v2662_v31, %v2255_v30  ;;  %v2260_v35 = vor.u32 %v2661_v32, %v2257_v33  ;;  %v2247_v36 = vld [vmem:[%s2849_s14 + $0x10] sm:$0xf]  ;;  %v2660_v37 = vld [vmem:[%s2849_s14 + $0x14] sm:$0xf0]  ;;  %v2659_v38 = vld [vmem:[%s2849_s14 + $0x14] sm:$0xf] }
  0x19   : > { %v2249_v39 = vld [vmem:[%s2849_s14 + $0x18] sm:$0xf0]  ;;  %v2248_v40 = vor.u32 %v2660_v37, %v2247_v36  ;;  %v2239_v42 = vld [vmem:[%s2849_s14] sm:$0xf]  ;;  %v2658_v43 = vld [vmem:[%s2849_s14 + $0x4] sm:$0xf0] }
  0x1a   : > { %v2252_v41 = vor.u32 %v2659_v38, %v2249_v39  ;;  %v2657_v44 = vld [vmem:[%s2849_s14 + $0x4] sm:$0xf]  ;;  %v2241_v45 = vld [vmem:[%s2849_s14 + $0x8] sm:$0xf0]  ;;  %v2240_v46 = vor.u32 %v2658_v43, %v2239_v42  ;;  %v2455_v63 = vld [vmem:[%s3696_s2 + $0xf0] sm:$0xf] }
  0x1b   : > { %511 = vmatpush.bf16.msra.mxu0 %v2280_v16  ;;  %673 = vmatpush.bf16.msra.mxu2 %v2280_v16  ;;  %v2244_v47 = vor.u32 %v2657_v44, %v2241_v45  ;;  %v2720_v0 = vld [vmem:[%s3696_s2 + $0xf4] sm:$0xf0]  ;;  %v2703_v1 = vld [vmem:[%s3696_s2 + $0x74] sm:$0xf]  ;;  %v2393_v3 = vld [vmem:[%s3696_s2 + $0x78] sm:$0xf0] }
  0x1c   : > { %560 = vmatpush.bf16.msra.mxu1 %v2284_v17  ;;  %722 = vmatpush.bf16.msra.mxu3 %v2284_v17  ;;  %v2456_v2 = vor.u32 %v2720_v0, %v2455_v63  ;;  %v2719_v4 = vld [vmem:[%s3696_s2 + $0xf4] sm:$0xf]  ;;  %v2457_v5 = vld [vmem:[%s3696_s2 + $0xf8] sm:$0xf0]  ;;  %v2396_v6 = vor.u32 %v2703_v1, %v2393_v3  ;;  %v2383_v8 = vld [vmem:[%s3696_s2 + $0x60] sm:$0xf] }
  0x1d   : > { %v2460_v7 = vor.u32 %v2719_v4, %v2457_v5  ;;  %v2702_v9 = vld [vmem:[%s3696_s2 + $0x64] sm:$0xf0]  ;;  %v2447_v10 = vld [vmem:[%s3696_s2 + $0xe0] sm:$0xf]  ;;  %v2701_v13 = vld [vmem:[%s3696_s2 + $0x64] sm:$0xf] }
  0x1e   : > { %v2384_v11 = vor.u32 %v2702_v9, %v2383_v8  ;;  %v2718_v12 = vld [vmem:[%s3696_s2 + $0xe4] sm:$0xf0]  ;;  %v2385_v14 = vld [vmem:[%s3696_s2 + $0x68] sm:$0xf0]  ;;  %v2717_v17 = vld [vmem:[%s3696_s2 + $0xe4] sm:$0xf] }
  0x1f   : > { %512 = vmatpush.bf16.msra.mxu0 %v2272_v22  ;;  %674 = vmatpush.bf16.msra.mxu2 %v2272_v22  ;;  %v2448_v15 = vor.u32 %v2718_v12, %v2447_v10  ;;  %v2388_v16 = vor.u32 %v2701_v13, %v2385_v14  ;;  %v2449_v18 = vld [vmem:[%s3696_s2 + $0xe8] sm:$0xf0]  ;;  %v2375_v19 = vld [vmem:[%s3696_s2 + $0x50] sm:$0xf]  ;;  %v2700_v21 = vld [vmem:[%s3696_s2 + $0x54] sm:$0xf0] }
  0x20   : > { %561 = vmatpush.bf16.msra.mxu1 %v2276_v23  ;;  %723 = vmatpush.bf16.msra.mxu3 %v2276_v23  ;;  %v2452_v20 = vor.u32 %v2717_v17, %v2449_v18  ;;  %v2439_v22 = vld [vmem:[%s3696_s2 + $0xd0] sm:$0xf]  ;;  %v2716_v23 = vld [vmem:[%s3696_s2 + $0xd4] sm:$0xf0]  ;;  %v2376_v24 = vor.u32 %v2700_v21, %v2375_v19  ;;  %v2699_v25 = vld [vmem:[%s3696_s2 + $0x54] sm:$0xf] }
  0x21   : > { %v2377_v26 = vld [vmem:[%s3696_s2 + $0x58] sm:$0xf0]  ;;  %v2715_v27 = vld [vmem:[%s3696_s2 + $0xd4] sm:$0xf]  ;;  %v2431_v36 = vld [vmem:[%s3696_s2 + $0xc0] sm:$0xf] }
  0x22   : > { %v2380_v30 = vor.u32 %v2699_v25, %v2377_v26  ;;  %v2687_v32 = vld [vmem:[%s3695_s1 + $0x30] sm:$0xff]  ;;  %v2714_v38 = vld [vmem:[%s3696_s2 + $0xc4] sm:$0xf0]  ;;  %v2697_v39 = vld [vmem:[%s3696_s2 + $0x44] sm:$0xf] }
  0x23   : > { %513 = vmatpush.bf16.msra.mxu0 %v2264_v28  ;;  %675 = vmatpush.bf16.msra.mxu2 %v2264_v28  ;;  %v2440_v28 = vor.u32 %v2716_v23, %v2439_v22  ;;  %v2679_v33 = vld [vmem:[%s3694_s0 + $0x30] sm:$0xff]  ;;  %v2713_v42 = vld [vmem:[%s3696_s2 + $0xc4] sm:$0xf]  ;;  %v2433_v43 = vld [vmem:[%s3696_s2 + $0xc8] sm:$0xf0] }
  0x24   : > { %562 = vmatpush.bf16.msra.mxu1 %v2268_v29  ;;  %724 = vmatpush.bf16.msra.mxu3 %v2268_v29  ;;  %v2441_v29 = vld [vmem:[%s3696_s2 + $0xd8] sm:$0xf0]  ;;  %v2436_v45 = vor.u32 %v2713_v42, %v2433_v43  ;;  %v2415_v60 = vld [vmem:[%s3696_s2 + $0xa0] sm:$0xf]  ;;  %v2693_v63 = vld [vmem:[%s3696_s2 + $0x24] sm:$0xf] }
  0x25   : > { %v2444_v31 = vor.u32 %v2715_v27, %v2441_v29  ;;  %v2353_v0 = vld [vmem:[%s3696_s2 + $0x28] sm:$0xf0]  ;;  %v2407_v8 = vld [vmem:[%s3696_s2 + $0x90] sm:$0xf]  ;;  %v2708_v10 = vld [vmem:[%s3696_s2 + $0x94] sm:$0xf0] }
  0x26   : > { %v2417_v3 = vld [vmem:[%s3696_s2 + $0xa8] sm:$0xf0]  ;;  %v2356_v4 = vor.u32 %v2693_v63, %v2353_v0  ;;  %v2345_v12 = vld [vmem:[%s3696_s2 + $0x18] sm:$0xf0]  ;;  %v2408_v13 = vor.u32 %v2708_v10, %v2407_v8  ;;  %v2707_v14 = vld [vmem:[%s3696_s2 + $0x94] sm:$0xf] }
  0x27   : > { %514 = vmatpush.bf16.msra.mxu0 %v2256_v34  ;;  %676 = vmatpush.bf16.msra.mxu2 %v2256_v34  ;;  %v2367_v34 = vld [vmem:[%s3696_s2 + $0x40] sm:$0xf]  ;;  %v2680_v17 = vld [vmem:[%s3694_s0 + $0x38] sm:$0xff]  ;;  %v2690_v21 = vld [vmem:[%s3696_s2 + $0x4] sm:$0xf0] }
  0x28   : > { %563 = vmatpush.bf16.msra.mxu1 %v2260_v35  ;;  %725 = vmatpush.bf16.msra.mxu3 %v2260_v35  ;;  %v2698_v35 = vld [vmem:[%s3696_s2 + $0x44] sm:$0xf0]  ;;  %v2399_v22 = vld [vmem:[%s3696_s2 + $0x80] sm:$0xf]  ;;  %v2689_v25 = vld [vmem:[%s3696_s2 + $0x4] sm:$0xf] }
  0x29   : > { %v2368_v37 = vor.u32 %v2698_v35, %v2367_v34  ;;  %v2337_v26 = vld [vmem:[%s3696_s2 + $0x8] sm:$0xf0] }
  0x2a   : > { %v2401_v29 = vld [vmem:[%s3696_s2 + $0x88] sm:$0xf0] }
  0x2b   : > { %515 = vmatpush.bf16.msra.mxu0 %v2248_v40  ;;  %677 = vmatpush.bf16.msra.mxu2 %v2248_v40  ;;  %v2369_v40 = vld [vmem:[%s3696_s2 + $0x48] sm:$0xf0] }
  0x2c   : > { %564 = vmatpush.bf16.msra.mxu1 %v2252_v41  ;;  %726 = vmatpush.bf16.msra.mxu3 %v2252_v41  ;;  %v2432_v41 = vor.u32 %v2714_v38, %v2431_v36  ;;  %v2372_v44 = vor.u32 %v2697_v39, %v2369_v40 }
  0x2f   : > { %516 = vmatpush.bf16.msra.mxu0 %v2240_v46  ;;  %678 = vmatpush.bf16.msra.mxu2 %v2240_v46  ;;  %v2359_v46 = vld [vmem:[%s3696_s2 + $0x30] sm:$0xf] }
  0x30   : > { %565 = vmatpush.bf16.msra.mxu1 %v2244_v47  ;;  %727 = vmatpush.bf16.msra.mxu3 %v2244_v47  ;;  %v2696_v47 = vld [vmem:[%s3696_s2 + $0x34] sm:$0xf0] }
  0x32   : > { %517 = vmatmul.bf16.vlgmr.msra.gmra.mxu0 %v2681_v48  ;;  %679 = vmatmul.bf16.vlgmr.msra.gmra.mxu2 %v2673_v49 }
  0x33   : > { %566 = vmatmul.bf16.vlgmr.msra.gmra.mxu1 %v2681_v48  ;;  %728 = vmatmul.bf16.vlgmr.msra.gmra.mxu3 %v2673_v49  ;;  %v2423_v48 = vld [vmem:[%s3696_s2 + $0xb0] sm:$0xf]  ;;  %v2360_v49 = vor.u32 %v2696_v47, %v2359_v46 }
  0x34   : > { %977 = vmatpush.bf16.msrb.mxu0 %v2392_v62  ;;  %1026 = vmatpush.bf16.msrb.mxu1 %v2456_v2  ;;  %v2710_v62 = vld [vmem:[%s3696_s2 + $0xa4] sm:$0xf0]  ;;  %v2709_v2 = vld [vmem:[%s3696_s2 + $0xa4] sm:$0xf] }
  0x35   : > { %1075 = vmatpush.bf16.msrb.mxu2 %v2396_v6  ;;  %1124 = vmatpush.bf16.msrb.mxu3 %v2460_v7  ;;  %v2416_v1 = vor.u32 %v2710_v62, %v2415_v60  ;;  %v2420_v5 = vor.u32 %v2709_v2, %v2417_v3  ;;  %v2343_v6 = vld [vmem:[%s3696_s2 + $0x10] sm:$0xf]  ;;  %v2692_v7 = vld [vmem:[%s3696_s2 + $0x14] sm:$0xf0] }
  0x36   : > { %v2344_v9 = vor.u32 %v2692_v7, %v2343_v6 }
  0x38   : > { %978 = vmatpush.bf16.msrb.mxu0 %v2384_v11  ;;  %1027 = vmatpush.bf16.msrb.mxu1 %v2448_v15  ;;  %v2691_v11 = vld [vmem:[%s3696_s2 + $0x14] sm:$0xf]  ;;  %v2409_v15 = vld [vmem:[%s3696_s2 + $0x98] sm:$0xf0] }
  0x39   : > { %1076 = vmatpush.bf16.msrb.mxu2 %v2388_v16  ;;  %1125 = vmatpush.bf16.msrb.mxu3 %v2452_v20  ;;  %v2688_v16 = vld [vmem:[%s3695_s1 + $0x38] sm:$0xff]  ;;  %v2348_v18 = vor.u32 %v2691_v11, %v2345_v12  ;;  %v2412_v19 = vor.u32 %v2707_v14, %v2409_v15  ;;  %v2335_v20 = vld [vmem:[%s3696_s2] sm:$0xf] }
  0x3a   : > { %v2336_v23 = vor.u32 %v2690_v21, %v2335_v20 }
  0x3c   : > { %979 = vmatpush.bf16.msrb.mxu0 %v2376_v24  ;;  %1028 = vmatpush.bf16.msrb.mxu1 %v2440_v28  ;;  %v2706_v24 = vld [vmem:[%s3696_s2 + $0x84] sm:$0xf0]  ;;  %v2705_v28 = vld [vmem:[%s3696_s2 + $0x84] sm:$0xf] }
  0x3d   : > { %1077 = vmatpush.bf16.msrb.mxu2 %v2380_v30  ;;  %1126 = vmatpush.bf16.msrb.mxu3 %v2444_v31  ;;  %v2400_v27 = vor.u32 %v2706_v24, %v2399_v22  ;;  %v2340_v30 = vor.u32 %v2689_v25, %v2337_v26  ;;  %v2404_v31 = vor.u32 %v2705_v28, %v2401_v29 }
  0x40   : > { %980 = vmatpush.bf16.msrb.mxu0 %v2368_v37  ;;  %1029 = vmatpush.bf16.msrb.mxu1 %v2432_v41 }
  0x41   : > { %1078 = vmatpush.bf16.msrb.mxu2 %v2372_v44  ;;  %1127 = vmatpush.bf16.msrb.mxu3 %v2436_v45 }
  0x42   : > { %522 = vmatmul.bf16.gmra.mxu0 %v2682_v50  ;;  %684 = vmatmul.bf16.gmra.mxu2 %v2674_v51 }
  0x43   : > { %571 = vmatmul.bf16.gmra.mxu1 %v2682_v50  ;;  %733 = vmatmul.bf16.gmra.mxu3 %v2674_v51  ;;  %v2712_v50 = vld [vmem:[%s3696_s2 + $0xb4] sm:$0xf0]  ;;  %v2695_v51 = vld [vmem:[%s3696_s2 + $0x34] sm:$0xf] }
  0x44   : > { %981 = vmatpush.bf16.msrb.mxu0 %v2360_v49 }
  0x52   : > { %527 = vmatmul.bf16.gmra.mxu0 %v2683_v52  ;;  %689 = vmatmul.bf16.gmra.mxu2 %v2675_v53 }
  0x53   : > { %576 = vmatmul.bf16.gmra.mxu1 %v2683_v52  ;;  %738 = vmatmul.bf16.gmra.mxu3 %v2675_v53  ;;  %v2361_v52 = vld [vmem:[%s3696_s2 + $0x38] sm:$0xf0]  ;;  %v2424_v53 = vor.u32 %v2712_v50, %v2423_v48 }
  0x55   : > { %1030 = vmatpush.bf16.msrb.mxu1 %v2424_v53 }
  0x59   : > { %1031 = vmatpush.bf16.msrb.mxu1 %v2416_v1 }
  0x5d   : > { %1032 = vmatpush.bf16.msrb.mxu1 %v2408_v13 }
  0x61   : > { %1033 = vmatpush.bf16.msrb.mxu1 %v2400_v27 }
  0x62   : > { %532 = vmatmul.bf16.gmra.mxu0 %v2684_v54  ;;  %694 = vmatmul.bf16.gmra.mxu2 %v2676_v55 }
  0x63   : > { %581 = vmatmul.bf16.gmra.mxu1 %v2684_v54  ;;  %743 = vmatmul.bf16.gmra.mxu3 %v2676_v55  ;;  %v2711_v54 = vld [vmem:[%s3696_s2 + $0xb4] sm:$0xf]  ;;  %v2425_v55 = vld [vmem:[%s3696_s2 + $0xb8] sm:$0xf0] }
  0x72   : > { %537 = vmatmul.bf16.gmra.mxu0 %v2685_v56  ;;  %699 = vmatmul.bf16.gmra.mxu2 %v2677_v57 }
  0x73   : > { %586 = vmatmul.bf16.gmra.mxu1 %v2685_v56  ;;  %748 = vmatmul.bf16.gmra.mxu3 %v2677_v57  ;;  %v2364_v56 = vor.u32 %v2695_v51, %v2361_v52  ;;  %v2428_v57 = vor.u32 %v2711_v54, %v2425_v55 }
  0x75   : > { %1079 = vmatpush.bf16.msrb.mxu2 %v2364_v56  ;;  %1128 = vmatpush.bf16.msrb.mxu3 %v2428_v57 }
  0x79   : > { %1080 = vmatpush.bf16.msrb.mxu2 %v2356_v4  ;;  %1129 = vmatpush.bf16.msrb.mxu3 %v2420_v5 }
  0x7d   : > { %1081 = vmatpush.bf16.msrb.mxu2 %v2348_v18  ;;  %1130 = vmatpush.bf16.msrb.mxu3 %v2412_v19 }
  0x81   : > { %1082 = vmatpush.bf16.msrb.mxu2 %v2340_v30  ;;  %1131 = vmatpush.bf16.msrb.mxu3 %v2404_v31 }
  0x82   : > { %542 = vmatmul.bf16.gmra.mxu0 %v2686_v58  ;;  %704 = vmatmul.bf16.gmra.mxu2 %v2678_v59 }
  0x83   : > { %591 = vmatmul.bf16.gmra.mxu1 %v2686_v58  ;;  %753 = vmatmul.bf16.gmra.mxu3 %v2678_v59  ;;  %v2351_v58 = vld [vmem:[%s3696_s2 + $0x20] sm:$0xf]  ;;  %v2694_v59 = vld [vmem:[%s3696_s2 + $0x24] sm:$0xf0] }
  0x84   : > { %v2352_v61 = vor.u32 %v2694_v59, %v2351_v58 }
  0x86   : > { %982 = vmatpush.bf16.msrb.mxu0 %v2352_v61 }
  0x8a   : > { %983 = vmatpush.bf16.msrb.mxu0 %v2344_v9 }
  0x8e   : > { %984 = vmatpush.bf16.msrb.mxu0 %v2336_v23 }
  0x92   : > { %547 = vmatmul.bf16.gmra.mxu0 %v2687_v32  ;;  %709 = vmatmul.bf16.gmra.mxu2 %v2679_v33 }
  0x93   : > { %596 = vmatmul.bf16.gmra.mxu1 %v2687_v32  ;;  %758 = vmatmul.bf16.gmra.mxu3 %v2679_v33 }
  0xa2   : > { %552 = vmatmul.bf16.gmra.mxu0 %v2688_v16  ;;  %714 = vmatmul.bf16.gmra.mxu2 %v2680_v17 }
  0xa3   : > { %601 = vmatmul.bf16.gmra.mxu1 %v2688_v16  ;;  %763 = vmatmul.bf16.gmra.mxu3 %v2680_v17 }
  0xaf   : > { %v518_v32 = vpop.f32.mrf.mxu0 }
  0xb0   : > { %v567_v33 = vpop.f32.mrf.mxu1 }
  0xb1   : > { %v607_v38 = vsub.f32 0.0, %v567_v33 }
  0xb5   : > { %v680_v34 = vpop.f32.mrf.mxu2 }
  0xb6   : > { %v729_v35 = vpop.f32.mrf.mxu3  ;;  %v681_v41 = vadd.f32 %v680_v34, %v607_v38 }
  0xb7   : > { %v520_v36 = vpop.f32.mrf.mxu0  ;;  %v730_v44 = vadd.f32 %v729_v35, %v518_v32 }
  0xb8   : > { %v569_v37 = vpop.f32.mrf.mxu1 }
  0xb9   : > { %v608_v39 = vsub.f32 0.0, %v569_v37 }
  0xbd   : > { %v682_v40 = vpop.f32.mrf.mxu2 }
  0xbe   : > { %v683_v42 = vadd.f32 %v682_v40, %v608_v39  ;;  %v731_v43 = vpop.f32.mrf.mxu3 }
  0xbf   : > { %v732_v45 = vadd.f32 %v731_v43, %v520_v36  ;;  %v523_v46 = vpop.f32.mrf.mxu0 }
  0xc0   : > { %v769_v47 = vpack.c.bf16 %v683_v42, %v681_v41  ;;  %v572_v48 = vpop.f32.mrf.mxu1 }
  0xc1   : > { %v770_v49 = vpack.c.bf16 %v732_v45, %v730_v44  ;;  %v609_v54 = vsub.f32 0.0, %v572_v48 }
  0xc2   : > { %985 = vmatmul.bf16.vlgmr.msrb.gmra.mxu0 %v769_v47  ;;  %1083 = vmatmul.bf16.vlgmr.msrb.gmra.mxu2 %v769_v47 }
  0xc3   : > { %1034 = vmatmul.bf16.vlgmr.msrb.gmra.mxu1 %v770_v49  ;;  %1132 = vmatmul.bf16.vlgmr.msrb.gmra.mxu3 %v770_v49 }
  0xc5   : > { %v685_v50 = vpop.f32.mrf.mxu2 }
  0xc6   : > { %v734_v51 = vpop.f32.mrf.mxu3  ;;  %v686_v57 = vadd.f32 %v685_v50, %v609_v54 }
  0xc7   : > { %v525_v52 = vpop.f32.mrf.mxu0  ;;  %v735_v60 = vadd.f32 %v734_v51, %v523_v46 }
  0xc8   : > { %v574_v53 = vpop.f32.mrf.mxu1 }
  0xc9   : > { %v610_v55 = vsub.f32 0.0, %v574_v53 }
  0xcd   : > { %v687_v56 = vpop.f32.mrf.mxu2 }
  0xce   : > { %v688_v58 = vadd.f32 %v687_v56, %v610_v55  ;;  %v736_v59 = vpop.f32.mrf.mxu3 }
  0xcf   : > { %v737_v61 = vadd.f32 %v736_v59, %v525_v52  ;;  %v528_v62 = vpop.f32.mrf.mxu0 }
  0xd0   : > { %v577_v63 = vpop.f32.mrf.mxu1  ;;  %v771_v0 = vpack.c.bf16 %v688_v58, %v686_v57 }
  0xd1   : > { %v772_v1 = vpack.c.bf16 %v737_v61, %v735_v60  ;;  %v611_v6 = vsub.f32 0.0, %v577_v63 }
  0xd2   : > { %990 = vmatmul.bf16.gmra.mxu0 %v771_v0  ;;  %1088 = vmatmul.bf16.gmra.mxu2 %v771_v0 }
  0xd3   : > { %1039 = vmatmul.bf16.gmra.mxu1 %v772_v1  ;;  %1137 = vmatmul.bf16.gmra.mxu3 %v772_v1 }
  0xd5   : > { %v690_v2 = vpop.f32.mrf.mxu2 }
  0xd6   : > { %v739_v3 = vpop.f32.mrf.mxu3  ;;  %v691_v9 = vadd.f32 %v690_v2, %v611_v6 }
  0xd7   : > { %v530_v4 = vpop.f32.mrf.mxu0  ;;  %v740_v12 = vadd.f32 %v739_v3, %v528_v62 }
  0xd8   : > { %v579_v5 = vpop.f32.mrf.mxu1 }
  0xd9   : > { %v612_v7 = vsub.f32 0.0, %v579_v5 }
  0xdd   : > { %v692_v8 = vpop.f32.mrf.mxu2 }
  0xde   : > { %v693_v10 = vadd.f32 %v692_v8, %v612_v7  ;;  %v741_v11 = vpop.f32.mrf.mxu3 }
  0xdf   : > { %v742_v13 = vadd.f32 %v741_v11, %v530_v4  ;;  %v533_v14 = vpop.f32.mrf.mxu0 }
  0xe0   : > { %v582_v15 = vpop.f32.mrf.mxu1  ;;  %v773_v16 = vpack.c.bf16 %v693_v10, %v691_v9 }
  0xe1   : > { %v774_v17 = vpack.c.bf16 %v742_v13, %v740_v12  ;;  %v613_v22 = vsub.f32 0.0, %v582_v15 }
  0xe2   : > { %995 = vmatmul.bf16.gmra.mxu0 %v773_v16  ;;  %1093 = vmatmul.bf16.gmra.mxu2 %v773_v16 }
  0xe3   : > { %1044 = vmatmul.bf16.gmra.mxu1 %v774_v17  ;;  %1142 = vmatmul.bf16.gmra.mxu3 %v774_v17 }
  0xe5   : > { %v695_v18 = vpop.f32.mrf.mxu2 }
  0xe6   : > { %v744_v19 = vpop.f32.mrf.mxu3  ;;  %v696_v25 = vadd.f32 %v695_v18, %v613_v22 }
  0xe7   : > { %v535_v20 = vpop.f32.mrf.mxu0  ;;  %v745_v28 = vadd.f32 %v744_v19, %v533_v14 }
  0xe8   : > { %v584_v21 = vpop.f32.mrf.mxu1 }
  0xe9   : > { %v614_v23 = vsub.f32 0.0, %v584_v21 }
  0xed   : > { %v697_v24 = vpop.f32.mrf.mxu2 }
  0xee   : > { %v698_v26 = vadd.f32 %v697_v24, %v614_v23  ;;  %v746_v27 = vpop.f32.mrf.mxu3 }
  0xef   : > { %v747_v29 = vadd.f32 %v746_v27, %v535_v20  ;;  %v538_v30 = vpop.f32.mrf.mxu0 }
  0xf0   : > { %v587_v31 = vpop.f32.mrf.mxu1  ;;  %v775_v32 = vpack.c.bf16 %v698_v26, %v696_v25 }
  0xf1   : > { %v776_v33 = vpack.c.bf16 %v747_v29, %v745_v28  ;;  %v615_v38 = vsub.f32 0.0, %v587_v31 }
  0xf2   : > { %1000 = vmatmul.bf16.gmra.mxu0 %v775_v32  ;;  %1098 = vmatmul.bf16.gmra.mxu2 %v775_v32 }
  0xf3   : > { %1049 = vmatmul.bf16.gmra.mxu1 %v776_v33  ;;  %1147 = vmatmul.bf16.gmra.mxu3 %v776_v33 }
  0xf5   : > { %v700_v34 = vpop.f32.mrf.mxu2 }
  0xf6   : > { %v749_v35 = vpop.f32.mrf.mxu3  ;;  %v701_v41 = vadd.f32 %v700_v34, %v615_v38  ;;  %v1174_v38 = vld [vmem:[%s3700_s6 + $0x8] sm:$0xff] }
  0xf7   : > { %v540_v36 = vpop.f32.mrf.mxu0  ;;  %v750_v44 = vadd.f32 %v749_v35, %v538_v30 }
  0xf8   : > { %v589_v37 = vpop.f32.mrf.mxu1 }
  0xf9   : > { %v616_v39 = vsub.f32 0.0, %v589_v37 }
  0xfd   : > { %v702_v40 = vpop.f32.mrf.mxu2 }
  0xfe   : > { %v703_v42 = vadd.f32 %v702_v40, %v616_v39  ;;  %v751_v43 = vpop.f32.mrf.mxu3  ;;  %v1238_v39 = vld [vmem:[%s3701_s7 + $0x8] sm:$0xff] }
  0xff   : > { %v752_v45 = vadd.f32 %v751_v43, %v540_v36  ;;  %v543_v46 = vpop.f32.mrf.mxu0  ;;  %v1237_v36 = vld [vmem:[%s3701_s7] sm:$0xff] }
 0x100   : > { %v777_v47 = vpack.c.bf16 %v703_v42, %v701_v41  ;;  %v592_v48 = vpop.f32.mrf.mxu1  ;;  %v1173_v42 = vld [vmem:[%s3700_s6] sm:$0xff] }
 0x101   : > { %v778_v49 = vpack.c.bf16 %v752_v45, %v750_v44  ;;  %v617_v54 = vsub.f32 0.0, %v592_v48 }
 0x102   : > { %1005 = vmatmul.bf16.gmra.mxu0 %v777_v47  ;;  %1103 = vmatmul.bf16.gmra.mxu2 %v777_v47 }
 0x103   : > { %1054 = vmatmul.bf16.gmra.mxu1 %v778_v49  ;;  %1152 = vmatmul.bf16.gmra.mxu3 %v778_v49 }
 0x105   : > { %v705_v50 = vpop.f32.mrf.mxu2 }
 0x106   : > { %v754_v51 = vpop.f32.mrf.mxu3  ;;  %v706_v57 = vadd.f32 %v705_v50, %v617_v54 }
 0x107   : > { %v545_v52 = vpop.f32.mrf.mxu0  ;;  %v755_v60 = vadd.f32 %v754_v51, %v543_v46 }
 0x108   : > { %v594_v53 = vpop.f32.mrf.mxu1 }
 0x109   : > { %v618_v55 = vsub.f32 0.0, %v594_v53 }
 0x10d   : > { %v707_v56 = vpop.f32.mrf.mxu2 }
 0x10e   : > { %v708_v58 = vadd.f32 %v707_v56, %v618_v55  ;;  %v756_v59 = vpop.f32.mrf.mxu3 }
 0x10f   : > { %v757_v61 = vadd.f32 %v756_v59, %v545_v52  ;;  %v548_v63 = vpop.f32.mrf.mxu0  ;;  %v1178_v59 = vld [vmem:[%s3700_s6 + $0x28] sm:$0xff] }
 0x110   : > { %v779_v62 = vpack.c.bf16 %v708_v58, %v706_v57  ;;  %v597_v0 = vpop.f32.mrf.mxu1  ;;  %v1241_v57 = vld [vmem:[%s3701_s7 + $0x20] sm:$0xff] }
 0x111   : > { %v780_v1 = vpack.c.bf16 %v757_v61, %v755_v60  ;;  %v619_v5 = vsub.f32 0.0, %v597_v0  ;;  %v1242_v60 = vld [vmem:[%s3701_s7 + $0x28] sm:$0xff] }
 0x112   : > { %1010 = vmatmul.bf16.gmra.mxu0 %v779_v62  ;;  %1108 = vmatmul.bf16.gmra.mxu2 %v779_v62 }
 0x113   : > { %1059 = vmatmul.bf16.gmra.mxu1 %v780_v1  ;;  %1157 = vmatmul.bf16.gmra.mxu3 %v780_v1 }
 0x115   : > { %v710_v2 = vpop.f32.mrf.mxu2 }
 0x116   : > { %v759_v3 = vpop.f32.mrf.mxu3  ;;  %v711_v9 = vadd.f32 %v710_v2, %v619_v5 }
 0x117   : > { %v550_v6 = vpop.f32.mrf.mxu0  ;;  %v760_v12 = vadd.f32 %v759_v3, %v548_v63  ;;  %v1177_v63 = vld [vmem:[%s3700_s6 + $0x20] sm:$0xff] }
 0x118   : > { %v599_v4 = vpop.f32.mrf.mxu1 }
 0x119   : > { %v620_v7 = vsub.f32 0.0, %v599_v4 }
 0x11d   : > { %v712_v8 = vpop.f32.mrf.mxu2 }
 0x11e   : > { %v713_v10 = vadd.f32 %v712_v8, %v620_v7  ;;  %v761_v11 = vpop.f32.mrf.mxu3 }
 0x11f   : > { %v762_v13 = vadd.f32 %v761_v11, %v550_v6  ;;  %v553_v17 = vpop.f32.mrf.mxu0 }
 0x120   : > { %v781_v14 = vpack.c.bf16 %v713_v10, %v711_v9  ;;  %v602_v15 = vpop.f32.mrf.mxu1 }
 0x121   : > { %v782_v16 = vpack.c.bf16 %v762_v13, %v760_v12  ;;  %v621_v21 = vsub.f32 0.0, %v602_v15 }
 0x122   : > { %1015 = vmatmul.bf16.gmra.mxu0 %v781_v14  ;;  %1113 = vmatmul.bf16.gmra.mxu2 %v781_v14  ;;  %v1245_v14 = vld [vmem:[%s3701_s7 + $0x40] sm:$0xff] }
 0x123   : > { %1064 = vmatmul.bf16.gmra.mxu1 %v782_v16  ;;  %1162 = vmatmul.bf16.gmra.mxu3 %v782_v16  ;;  %v1182_v16 = vld [vmem:[%s3700_s6 + $0x48] sm:$0xff] }
 0x125   : > { %v715_v18 = vpop.f32.mrf.mxu2 }
 0x126   : > { %v764_v19 = vpop.f32.mrf.mxu3  ;;  %v716_v24 = vadd.f32 %v715_v18, %v621_v21 }
 0x127   : > { %v555_v25 = vpop.f32.mrf.mxu0  ;;  %v765_v28 = vadd.f32 %v764_v19, %v553_v17  ;;  %v1246_v17 = vld [vmem:[%s3701_s7 + $0x48] sm:$0xff] }
 0x128   : > { %v604_v20 = vpop.f32.mrf.mxu1 }
 0x129   : > { %v622_v22 = vsub.f32 0.0, %v604_v20  ;;  %v1181_v20 = vld [vmem:[%s3700_s6 + $0x40] sm:$0xff] }
 0x12d   : > { %v717_v23 = vpop.f32.mrf.mxu2 }
 0x12e   : > { %v718_v26 = vadd.f32 %v717_v23, %v622_v22  ;;  %v766_v27 = vpop.f32.mrf.mxu3 }
 0x12f   : > { %v767_v29 = vadd.f32 %v766_v27, %v555_v25 }
 0x130   : > { %v783_v30 = vpack.c.bf16 %v718_v26, %v716_v24 }
 0x131   : > { %v784_v31 = vpack.c.bf16 %v767_v29, %v765_v28 }
 0x132   : > { %1020 = vmatmul.bf16.gmra.mxu0 %v783_v30  ;;  %1118 = vmatmul.bf16.gmra.mxu2 %v783_v30 }
 0x133   : > { %1069 = vmatmul.bf16.gmra.mxu1 %v784_v31  ;;  %1167 = vmatmul.bf16.gmra.mxu3 %v784_v31 }
 0x13f   : > { %v986_v32 = vpop.f32.mrf.mxu0 }
 0x140   : > { %v1035_v33 = vpop.f32.mrf.mxu1 }
 0x141   : > { %v1036_v34 = vadd.f32 %v1035_v33, %v986_v32 }
 0x143   : > { %v1269_v44 = vmul.f32 %v1237_v36, %v1036_v34  ;;  %v1205_v47 = vmul.f32 %v1173_v42, %v1036_v34  ;;  %v1185_v42 = vld [vmem:[%s3700_s6 + $0x60] sm:$0xff] }
 0x145   : > { %v1084_v35 = vpop.f32.mrf.mxu2 }
 0x146   : > { %v1133_v37 = vpop.f32.mrf.mxu3 }
 0x147   : > { %v1134_v40 = vadd.f32 %v1133_v37, %v1084_v35  ;;  %v3132_v41 = vpop.f32.mrf.mxu0  ;;  %v1249_v35 = vld [vmem:[%s3701_s7 + $0x60] sm:$0xff]  ;;  %v1186_v37 = vld [vmem:[%s3700_s6 + $0x68] sm:$0xff] }
 0x148   : > { %v3137_v43 = vpop.f32.mrf.mxu1 }
 0x149   : > { %v1206_v45 = vmul.f32 %v1174_v38, %v1134_v40  ;;  %v1270_v46 = vmul.f32 %v1238_v39, %v1134_v40  ;;  %v1250_v38 = vld [vmem:[%s3701_s7 + $0x68] sm:$0xff] }
 0x14b   : > { %v1301_v48 = vsub.f32 0.0, %v1270_v46  ;;  %v3139_v49 = vadd.f32 %v1269_v44, %v1206_v45 }
 0x14d   : > { %3704 = vst [vmem:[#allocation2_spill] sm:$0xff] %v3139_v49  ;;  %v3141_v50 = vadd.f32 %v1301_v48, %v1205_v47  ;;  %v3143_v51 = vpop.f32.mrf.mxu2  ;;  %v1259_v49 = vld [vmem:[%s3701_s7 + $0xb0] sm:$0xff] }
 0x14e   : > { %v3145_v52 = vpop.f32.mrf.mxu3 }
 0x14f   : > { %3705 = vst [vmem:[#allocation3_spill] sm:$0xff] %v3141_v50  ;;  %v991_v53 = vpop.f32.mrf.mxu0  ;;  %v1194_v50 = vld [vmem:[%s3700_s6 + $0xa8] sm:$0xff] }
 0x150   : > { %v1040_v54 = vpop.f32.mrf.mxu1 }
 0x151   : > { %v1041_v55 = vadd.f32 %v1040_v54, %v991_v53 }
 0x153   : > { %v1273_v1 = vmul.f32 %v1241_v57, %v1041_v55  ;;  %v1209_v4 = vmul.f32 %v1177_v63, %v1041_v55  ;;  %v1253_v63 = vld [vmem:[%s3701_s7 + $0x80] sm:$0xff] }
 0x155   : > { %v1089_v56 = vpop.f32.mrf.mxu2 }
 0x156   : > { %v1138_v58 = vpop.f32.mrf.mxu3 }
 0x157   : > { %v1139_v61 = vadd.f32 %v1138_v58, %v1089_v56  ;;  %v3156_v62 = vpop.f32.mrf.mxu0 }
 0x158   : > { %v3161_v0 = vpop.f32.mrf.mxu1 }
 0x159   : > { %v1210_v2 = vmul.f32 %v1178_v59, %v1139_v61  ;;  %v1274_v3 = vmul.f32 %v1242_v60, %v1139_v61 }
 0x15b   : > { %v1303_v5 = vsub.f32 0.0, %v1274_v3  ;;  %v3163_v6 = vadd.f32 %v1273_v1, %v1210_v2  ;;  %v1190_v2 = vld [vmem:[%s3700_s6 + $0x88] sm:$0xff] }
 0x15c   : > { %v1254_v3 = vld [vmem:[%s3701_s7 + $0x88] sm:$0xff] }
 0x15d   : > { %v3165_v7 = vadd.f32 %v1303_v5, %v1209_v4  ;;  %v3167_v8 = vpop.f32.mrf.mxu2 }
 0x15e   : > { %v3169_v9 = vpop.f32.mrf.mxu3 }
 0x15f   : > { %3706 = vst [vmem:[#allocation4_spill] sm:$0xff] %v3165_v7  ;;  %v996_v10 = vpop.f32.mrf.mxu0  ;;  %v1195_v7 = vld [vmem:[%s3700_s6 + $0xb0] sm:$0xff] }
 0x160   : > { %v1045_v11 = vpop.f32.mrf.mxu1 }
 0x161   : > { %v1046_v12 = vadd.f32 %v1045_v11, %v996_v10  ;;  %v1189_v10 = vld [vmem:[%s3700_s6 + $0x80] sm:$0xff] }
 0x163   : > { %v1277_v22 = vmul.f32 %v1245_v14, %v1046_v12  ;;  %v1213_v25 = vmul.f32 %v1181_v20, %v1046_v12 }
 0x165   : > { %v1094_v13 = vpop.f32.mrf.mxu2 }
 0x166   : > { %v1143_v15 = vpop.f32.mrf.mxu3 }
 0x167   : > { %v1144_v18 = vadd.f32 %v1143_v15, %v1094_v13  ;;  %v3180_v19 = vpop.f32.mrf.mxu0 }
 0x168   : > { %v3185_v21 = vpop.f32.mrf.mxu1 }
 0x169   : > { %v1214_v23 = vmul.f32 %v1182_v16, %v1144_v18  ;;  %v1278_v24 = vmul.f32 %v1246_v17, %v1144_v18 }
 0x16b   : > { %v1305_v26 = vsub.f32 0.0, %v1278_v24  ;;  %v3187_v27 = vadd.f32 %v1277_v22, %v1214_v23 }
 0x16d   : > { %v3189_v28 = vadd.f32 %v1305_v26, %v1213_v25  ;;  %v3191_v29 = vpop.f32.mrf.mxu2 }
 0x16e   : > { %v3193_v30 = vpop.f32.mrf.mxu3 }
 0x16f   : > { %v1001_v31 = vpop.f32.mrf.mxu0 }
 0x170   : > { %v1050_v32 = vpop.f32.mrf.mxu1 }
 0x171   : > { %v1051_v33 = vadd.f32 %v1050_v32, %v1001_v31 }
 0x173   : > { %v1281_v45 = vmul.f32 %v1249_v35, %v1051_v33  ;;  %v1217_v48 = vmul.f32 %v1185_v42, %v1051_v33 }
 0x175   : > { %v1099_v34 = vpop.f32.mrf.mxu2 }
 0x176   : > { %v1148_v36 = vpop.f32.mrf.mxu3 }
 0x177   : > { %v1149_v39 = vadd.f32 %v1148_v36, %v1099_v34  ;;  %v3204_v40 = vpop.f32.mrf.mxu0 }
 0x178   : > { %v3209_v44 = vpop.f32.mrf.mxu1 }
 0x179   : > { %v1218_v46 = vmul.f32 %v1186_v37, %v1149_v39  ;;  %v1282_v47 = vmul.f32 %v1250_v38, %v1149_v39 }
 0x17b   : > { %v1307_v53 = vsub.f32 0.0, %v1282_v47  ;;  %v3211_v54 = vadd.f32 %v1281_v45, %v1218_v46 }
 0x17d   : > { %v3213_v55 = vadd.f32 %v1307_v53, %v1217_v48  ;;  %v1101_v56 = vpop.f32.mrf.mxu2 }
 0x17e   : > { %v1150_v57 = vpop.f32.mrf.mxu3 }
 0x17f   : > { %v1006_v58 = vpop.f32.mrf.mxu0 }
 0x180   : > { %v1055_v59 = vpop.f32.mrf.mxu1 }
 0x181   : > { %v1056_v60 = vadd.f32 %v1055_v59, %v1006_v58 }
 0x183   : > { %v1285_v12 = vmul.f32 %v1253_v63, %v1056_v60  ;;  %v1221_v15 = vmul.f32 %v1189_v10, %v1056_v60  ;;  %v1266_v63 = vld [vmem:[%s3701_s7 + $0xe8] sm:$0xff]  ;;  %v1264_v10 = vld [vmem:[%s3701_s7 + $0xd8] sm:$0xff] }
 0x185   : > { %v1104_v61 = vpop.f32.mrf.mxu2 }
 0x186   : > { %v1153_v1 = vpop.f32.mrf.mxu3 }
 0x187   : > { %v1154_v4 = vadd.f32 %v1153_v1, %v1104_v61  ;;  %v1008_v5 = vpop.f32.mrf.mxu0 }
 0x188   : > { %v1057_v11 = vpop.f32.mrf.mxu1 }
 0x189   : > { %v1222_v13 = vmul.f32 %v1190_v2, %v1154_v4  ;;  %v1286_v14 = vmul.f32 %v1254_v3, %v1154_v4  ;;  %v1258_v3 = vld [vmem:[%s3701_s7 + $0xa8] sm:$0xff] }
 0x18b   : > { %v1309_v16 = vsub.f32 0.0, %v1286_v14  ;;  %v3227_v17 = vadd.f32 %v1285_v12, %v1222_v13  ;;  %v3242_v12 = vadd.f32 %v1150_v57, %v1101_v56  ;;  %v1260_v13 = vld [vmem:[%s3701_s7 + $0xb8] sm:$0xff]  ;;  %v1265_v57 = vld [vmem:[%s3701_s7 + $0xe0] sm:$0xff] }
 0x18c   : > { %v1200_v56 = vld [vmem:[%s3700_s6 + $0xd8] sm:$0xff] }
 0x18d   : > { %v3229_v18 = vadd.f32 %v1309_v16, %v1221_v15  ;;  %v1106_v20 = vpop.f32.mrf.mxu2  ;;  %v1202_v16 = vld [vmem:[%s3700_s6 + $0xe8] sm:$0xff] }
 0x18e   : > { %v1155_v22 = vpop.f32.mrf.mxu3 }
 0x18f   : > { %v1011_v23 = vpop.f32.mrf.mxu0 }
 0x190   : > { %v1060_v24 = vpop.f32.mrf.mxu1 }
 0x195   : > { %v1109_v25 = vpop.f32.mrf.mxu2 }
 0x196   : > { %v1158_v26 = vpop.f32.mrf.mxu3 }
 0x197   : > { %v1013_v31 = vpop.f32.mrf.mxu0  ;;  %v3231_v60 = vadd.f32 %v1158_v26, %v1109_v25  ;;  %v3250_v25 = vadd.f32 %v1057_v11, %v1008_v5  ;;  %v3252_v26 = vadd.f32 %v1155_v22, %v1106_v20  ;;  %v1267_v22 = vld [vmem:[%s3701_s7 + $0xf0] sm:$0xff] }
 0x198   : > { %v1062_v32 = vpop.f32.mrf.mxu1 }
 0x199   : > { %v3266_v5 = vmul.f32 %v1258_v3, %v3231_v60 }
 0x19d   : > { %v1111_v33 = vpop.f32.mrf.mxu2 }
 0x19e   : > { %v1160_v34 = vpop.f32.mrf.mxu3 }
 0x19f   : > { %v1016_v35 = vpop.f32.mrf.mxu0  ;;  %v1161_v4 = vadd.f32 %v1160_v34, %v1111_v33  ;;  %v1262_v33 = vld [vmem:[%s3701_s7 + $0xc8] sm:$0xff] }
 0x1a0   : > { %v1065_v36 = vpop.f32.mrf.mxu1 }
 0x1a5   : > { %v1114_v37 = vpop.f32.mrf.mxu2 }
 0x1a6   : > { %v1163_v38 = vpop.f32.mrf.mxu3 }
 0x1a7   : > { %v1018_v39 = vpop.f32.mrf.mxu0  ;;  %v1164_v14 = vadd.f32 %v1163_v38, %v1114_v37 }
 0x1a8   : > { %v1067_v42 = vpop.f32.mrf.mxu1 }
 0x1a9   : > { %v1068_v11 = vadd.f32 %v1067_v42, %v1018_v39  ;;  %v1198_v39 = vld [vmem:[%s3700_s6 + $0xc8] sm:$0xff]  ;;  %v1263_v42 = vld [vmem:[%s3701_s7 + $0xd0] sm:$0xff] }
 0x1ad   : > { %v1116_v45 = vpop.f32.mrf.mxu2 }
 0x1ae   : > { %v1165_v46 = vpop.f32.mrf.mxu3 }
 0x1af   : > { %v1021_v47 = vpop.f32.mrf.mxu0  ;;  %v1166_v61 = vadd.f32 %v1165_v46, %v1116_v45  ;;  %v3263_v45 = vadd.f32 %v1060_v24, %v1011_v23  ;;  %v1063_v23 = vadd.f32 %v1062_v32, %v1013_v31  ;;  %v3277_v24 = vmul.f32 %v1260_v13, %v1161_v4  ;;  %v1203_v32 = vld [vmem:[%s3700_s6 + $0xf0] sm:$0xff]  ;;  %v1261_v13 = vld [vmem:[%s3701_s7 + $0xc0] sm:$0xff] }
 0x1b0   : > { %v1070_v48 = vpop.f32.mrf.mxu1 }
 0x1b1   : > { %v1071_v15 = vadd.f32 %v1070_v48, %v1021_v47  ;;  %v1296_v20 = vmul.f32 %v1264_v10, %v1166_v61  ;;  %v1204_v47 = vld [vmem:[%s3700_s6 + $0xf8] sm:$0xff]  ;;  %v1232_v3 = vmul.f32 %v1200_v56, %v1166_v61  ;;  %v1230_v56 = vmul.f32 %v1198_v39, %v1164_v14 }
 0x1b2   : > { %v1268_v48 = vld [vmem:[%s3701_s7 + $0xf8] sm:$0xff] }
 0x1b3   : > { %v1297_v31 = vmul.f32 %v1265_v57, %v1071_v15  ;;  %v1196_v10 = vld [vmem:[%s3700_s6 + $0xb8] sm:$0xff]  ;;  %v1295_v57 = vmul.f32 %v1263_v42, %v1068_v11 }
 0x1b4   : > { %v1192_v42 = vld [vmem:[%s3700_s6 + $0x98] sm:$0xff] }
 0x1b5   : > { %v1119_v53 = vpop.f32.mrf.mxu2 }
 0x1b6   : > { %v1168_v58 = vpop.f32.mrf.mxu3 }
 0x1b7   : > { %v1169_v59 = vadd.f32 %v1168_v58, %v1119_v53  ;;  %v1023_v1 = vpop.f32.mrf.mxu0  ;;  %v1201_v53 = vld [vmem:[%s3700_s6 + $0xe0] sm:$0xff] }
 0x1b8   : > { %v1072_v2 = vpop.f32.mrf.mxu1 }
 0x1b9   : > { %v1298_v34 = vmul.f32 %v1266_v63, %v1169_v59  ;;  %v1073_v37 = vadd.f32 %v1072_v2, %v1023_v1  ;;  %v1234_v58 = vmul.f32 %v1202_v16, %v1169_v59  ;;  %v1066_v1 = vadd.f32 %v1065_v36, %v1016_v35  ;;  %v1199_v59 = vld [vmem:[%s3700_s6 + $0xd0] sm:$0xff] }
 0x1ba   : > { %v1294_v2 = vmul.f32 %v1262_v33, %v1164_v14  ;;  %v1256_v33 = vld [vmem:[%s3701_s7 + $0x98] sm:$0xff]  ;;  %v1228_v14 = vmul.f32 %v1196_v10, %v1161_v4 }
 0x1bb   : > { %v1315_v35 = vsub.f32 0.0, %v1298_v34  ;;  %v1299_v36 = vmul.f32 %v1267_v22, %v1073_v37  ;;  %v1197_v34 = vld [vmem:[%s3700_s6 + $0xc0] sm:$0xff]  ;;  %v1346_v22 = vadd.f32 %v1297_v31, %v1234_v58  ;;  %v1293_v39 = vmul.f32 %v1261_v13, %v1066_v1  ;;  %v1252_v13 = vld [vmem:[%s3701_s7 + $0x78] sm:$0xff] }
 0x1bc   : > { %v1344_v58 = vadd.f32 %v1295_v57, %v1232_v3  ;;  %v1288_v4 = vmul.f32 %v1256_v33, %v3252_v26  ;;  %v1229_v10 = vmul.f32 %v1197_v34, %v1066_v1  ;;  %v1193_v3 = vld [vmem:[%s3700_s6 + $0xa0] sm:$0xff]  ;;  %v1224_v1 = vmul.f32 %v1192_v42, %v3252_v26  ;;  %v1188_v33 = vld [vmem:[%s3700_s6 + $0x78] sm:$0xff] }
 0x1bd   : > { %v1121_v38 = vpop.f32.mrf.mxu2 }
 0x1be   : > { %v1170_v46 = vpop.f32.mrf.mxu3  ;;  %v1310_v34 = vsub.f32 0.0, %v1288_v4 }
 0x1bf   : > { %v1171_v63 = vadd.f32 %v1170_v46, %v1121_v38  ;;  %v1314_v38 = vsub.f32 0.0, %v1296_v20  ;;  %v1233_v46 = vmul.f32 %v1201_v53, %v1071_v15  ;;  %v1313_v20 = vsub.f32 0.0, %v1294_v2  ;;  %v1257_v53 = vld [vmem:[%s3701_s7 + $0xa0] sm:$0xff] }
 0x1c0   : > { %v1231_v15 = vmul.f32 %v1199_v59, %v1068_v11  ;;  %v1226_v11 = vmul.f32 %v1194_v50, %v3231_v60  ;;  %v1291_v2 = vmul.f32 %v1259_v49, %v1063_v23  ;;  %v1255_v59 = vld [vmem:[%s3701_s7 + $0x90] sm:$0xff]  ;;  %v1146_v60 = vadd.f32 %v3193_v30, %v3191_v29 }
 0x1c1   : > { %v1236_v61 = vmul.f32 %v1204_v47, %v1171_v63  ;;  %v1300_v16 = vmul.f32 %v1268_v48, %v1171_v63  ;;  %v1235_v47 = vmul.f32 %v1203_v32, %v1073_v37  ;;  %v1345_v37 = vadd.f32 %v1315_v35, %v1233_v46  ;;  %v1248_v46 = vld [vmem:[%s3701_s7 + $0x58] sm:$0xff] }
 0x1c2   : > { %v1312_v35 = vsub.f32 0.0, %v3277_v24  ;;  %v1343_v49 = vadd.f32 %v1314_v38, %v1231_v15  ;;  %v1191_v24 = vld [vmem:[%s3700_s6 + $0x90] sm:$0xff]  ;;  %v1340_v57 = vadd.f32 %v1291_v2, %v1228_v14  ;;  %v1341_v38 = vadd.f32 %v1313_v20, %v1229_v10 }
 0x1c3   : > { %v1316_v48 = vsub.f32 0.0, %v1300_v16  ;;  %v1348_v63 = vadd.f32 %v1299_v36, %v1236_v61  ;;  %v1342_v36 = vadd.f32 %v1293_v39, %v1230_v56  ;;  %v1289_v61 = vmul.f32 %v1257_v53, %v3263_v45 }
 0x1c4   : > { %v1227_v16 = vmul.f32 %v1195_v7, %v1063_v23  ;;  %v1311_v56 = vsub.f32 0.0, %v3266_v5  ;;  %v1053_v30 = vadd.f32 %v3209_v44, %v3204_v40  ;;  %v1284_v7 = vmul.f32 %v1252_v13, %v3242_v12  ;;  %v1251_v40 = vld [vmem:[%s3701_s7 + $0x70] sm:$0xff] }
 0x1c5   : > { %v1347_v31 = vadd.f32 %v1316_v48, %v1235_v47  ;;  %v1364_v32 = vpack.c.bf16 %v1348_v63, %v1346_v22  ;;  %v1362_v29 = vpack.c.bf16 %v1344_v58, %v1342_v36  ;;  %v1287_v26 = vmul.f32 %v1255_v59, %v3250_v25  ;;  %v1183_v13 = vld [vmem:[%s3700_s6 + $0x50] sm:$0xff]  ;;  %v1240_v59 = vld [vmem:[%s3701_s7 + $0x18] sm:$0xff] }
 0x1c6   : > { %v1225_v23 = vmul.f32 %v1193_v3, %v3263_v45  ;;  %v1338_v5 = vadd.f32 %v1289_v61, %v1226_v11  ;;  %v1361_v22 = vpack.c.bf16 %v1343_v49, %v1341_v38  ;;  %v1339_v47 = vadd.f32 %v1312_v35, %v1227_v16  ;;  %v1184_v45 = vld [vmem:[%s3700_s6 + $0x58] sm:$0xff] }
 0x1c7   : > { %1494 = vmatpush.bf16.msra.mxu1 %v1364_v32  ;;  %1656 = vmatpush.bf16.msra.mxu3 %v1364_v32  ;;  %v1363_v50 = vpack.c.bf16 %v1347_v31, %v1345_v37  ;;  %v1220_v44 = vmul.f32 %v1188_v33, %v3242_v12  ;;  %v1223_v48 = vmul.f32 %v1191_v24, %v3250_v25  ;;  %v1187_v12 = vld [vmem:[%s3700_s6 + $0x70] sm:$0xff]  ;;  %v1244_v25 = vld [vmem:[%s3701_s7 + $0x38] sm:$0xff]  ;;  %v1308_v58 = vsub.f32 0.0, %v1284_v7 }
 0x1c8   : > { %v1336_v63 = vadd.f32 %v1287_v26, %v1224_v1  ;;  %v1337_v14 = vadd.f32 %v1311_v56, %v1225_v23  ;;  %v1360_v39 = vpack.c.bf16 %v1340_v57, %v1338_v5  ;;  %v1141_v20 = vadd.f32 %v3169_v9, %v3167_v8  ;;  %v1247_v8 = vld [vmem:[%s3701_s7 + $0x50] sm:$0xff] }
 0x1c9   : > { %1445 = vmatpush.bf16.msra.mxu0 %v1363_v50  ;;  %1607 = vmatpush.bf16.msra.mxu2 %v1363_v50  ;;  %v1048_v15 = vadd.f32 %v3185_v21, %v3180_v19  ;;  %v1280_v42 = vmul.f32 %v1248_v46, %v1146_v60  ;;  %v1283_v53 = vmul.f32 %v1251_v40, %v1053_v30  ;;  %v1180_v19 = vld [vmem:[%s3700_s6 + $0x38] sm:$0xff]  ;;  %v1179_v1 = vld [vmem:[%s3700_s6 + $0x30] sm:$0xff]  ;;  %v2729_v40 = vld [vmem:[%s3698_s4] sm:$0xff] }
 0x1ca   : > { %v1359_v37 = vpack.c.bf16 %v1339_v47, %v1337_v14  ;;  %v1335_v31 = vadd.f32 %v1310_v34, %v1223_v48  ;;  %v1216_v9 = vmul.f32 %v1184_v45, %v1146_v60  ;;  %v1219_v21 = vmul.f32 %v1187_v12, %v1053_v30  ;;  %v1239_v56 = vld [vmem:[%s3701_s7 + $0x10] sm:$0xff]  ;;  %v2585_v45 = vld [vmem:[%s3699_s5 + $0x78] sm:$0xf0] }
 0x1cb   : > { %1495 = vmatpush.bf16.msra.mxu1 %v1362_v29  ;;  %1657 = vmatpush.bf16.msra.mxu3 %v1362_v29  ;;  %v1332_v32 = vadd.f32 %v1283_v53, %v1220_v44  ;;  %v1358_v4 = vpack.c.bf16 %v1336_v63, %v3227_v17  ;;  %v1136_v11 = vadd.f32 %v3145_v52, %v3143_v51  ;;  %v1306_v35 = vsub.f32 0.0, %v1280_v42  ;;  %v1243_v51 = vld [vmem:[%s3701_s7 + $0x30] sm:$0xff]  ;;  %v2768_v53 = vld [vmem:[%s3699_s5 + $0xf4] sm:$0xf0] }
 0x1cc   : > { %v1043_v2 = vadd.f32 %v3161_v0, %v3156_v62  ;;  %v1276_v10 = vmul.f32 %v1244_v25, %v1141_v20  ;;  %v1279_v3 = vmul.f32 %v1247_v8, %v1048_v15  ;;  %v1357_v17 = vpack.c.bf16 %v1335_v31, %v3229_v18  ;;  %v1176_v62 = vld [vmem:[%s3700_s6 + $0x18] sm:$0xff]  ;;  %v2751_v48 = vld [vmem:[%s3699_s5 + $0x74] sm:$0xf]  ;;  %v2647_v25 = vld [vmem:[%s3699_s5 + $0xf0] sm:$0xf] }
 0x1cd   : > { %1446 = vmatpush.bf16.msra.mxu0 %v1361_v22  ;;  %1608 = vmatpush.bf16.msra.mxu2 %v1361_v22  ;;  %v1331_v36 = vadd.f32 %v1308_v58, %v1219_v21  ;;  %v1212_v52 = vmul.f32 %v1180_v19, %v1141_v20  ;;  %v1215_v0 = vmul.f32 %v1183_v13, %v1048_v15  ;;  %v3708_v22 = vld [vmem:[#allocation2_spill] sm:$0xff]  ;;  %v2767_v63 = vld [vmem:[%s3699_s5 + $0xf4] sm:$0xf]  ;;  %v2583_v20 = vld [vmem:[%s3699_s5 + $0x70] sm:$0xf] }
 0x1ce   : > { %v1328_v50 = vadd.f32 %v1279_v3, %v1216_v9  ;;  %v1356_v49 = vpack.c.bf16 %v1332_v32, %v3211_v54  ;;  %v1038_v60 = vadd.f32 %v3137_v43, %v3132_v41  ;;  %v1272_v18 = vmul.f32 %v1240_v59, %v1136_v11  ;;  %v1175_v43 = vld [vmem:[%s3700_s6 + $0x10] sm:$0xff]  ;;  %v2752_v15 = vld [vmem:[%s3699_s5 + $0x74] sm:$0xf0]  ;;  %v2730_v31 = vld [vmem:[%s3698_s4 + $0x8] sm:$0xff] }
 0x1cf   : > { %1496 = vmatpush.bf16.msra.mxu1 %v1360_v39  ;;  %1658 = vmatpush.bf16.msra.mxu3 %v1360_v39  ;;  %v1275_v61 = vmul.f32 %v1243_v51, %v1043_v2  ;;  %v1304_v16 = vsub.f32 0.0, %v1276_v10  ;;  %v1355_v33 = vpack.c.bf16 %v1331_v36, %v3213_v55  ;;  %v1327_v24 = vadd.f32 %v1306_v35, %v1215_v0  ;;  %v2649_v39 = vld [vmem:[%s3699_s5 + $0xf8] sm:$0xf0]  ;;  %v2749_v8 = vld [vmem:[%s3699_s5 + $0x64] sm:$0xf]  ;;  %v2723_v35 = vld [vmem:[%s3697_s3 + $0x10] sm:$0xff] }
 0x1d0   : > { %v1208_v54 = vmul.f32 %v1176_v62, %v1136_v11  ;;  %v1211_v57 = vmul.f32 %v1179_v1, %v1043_v2  ;;  %v1354_v41 = vpack.c.bf16 %v1328_v50, %v3187_v27  ;;  %v1271_v29 = vmul.f32 %v1239_v56, %v1038_v60  ;;  %v3707_v27 = vld [vmem:[#allocation4_spill] sm:$0xff]  ;;  %v2577_v9 = vld [vmem:[%s3699_s5 + $0x68] sm:$0xf0]  ;;  %v2765_v19 = vld [vmem:[%s3699_s5 + $0xe4] sm:$0xf] }
 0x1d1   : > { %1447 = vmatpush.bf16.msra.mxu0 %v1359_v37  ;;  %1609 = vmatpush.bf16.msra.mxu2 %v1359_v37  ;;  %v1324_v38 = vadd.f32 %v1275_v61, %v1212_v52  ;;  %v1302_v30 = vsub.f32 0.0, %v1272_v18  ;;  %v1353_v55 = vpack.c.bf16 %v1327_v24, %v3189_v28  ;;  %v1207_v26 = vmul.f32 %v1175_v43, %v1038_v60  ;;  %v2721_v28 = vld [vmem:[%s3697_s3] sm:$0xff]  ;;  %v2722_v37 = vld [vmem:[%s3697_s3 + $0x8] sm:$0xff]  ;;  %v2747_v36 = vld [vmem:[%s3699_s5 + $0x54] sm:$0xf] }
 0x1d2   : > { %v1323_v7 = vadd.f32 %v1304_v16, %v1211_v57  ;;  %v1320_v23 = vadd.f32 %v1271_v29, %v1208_v54  ;;  %v2588_v14 = vor.u32 %v2751_v48, %v2585_v45  ;;  %v2652_v42 = vor.u32 %v2767_v63, %v2649_v39  ;;  %v2641_v32 = vld [vmem:[%s3699_s5 + $0xe8] sm:$0xf0]  ;;  %v2750_v11 = vld [vmem:[%s3699_s5 + $0x64] sm:$0xf0]  ;;  %v2639_v13 = vld [vmem:[%s3699_s5 + $0xe0] sm:$0xf] }
 0x1d3   : > { %1497 = vmatpush.bf16.msra.mxu1 %v1358_v4  ;;  %1659 = vmatpush.bf16.msra.mxu3 %v1358_v4  ;;  %v1352_v46 = vpack.c.bf16 %v1324_v38, %v3163_v6  ;;  %v1319_v5 = vadd.f32 %v1302_v30, %v1207_v26  ;;  %v3709_v6 = vld [vmem:[#allocation3_spill] sm:$0xff]  ;;  %v2584_v12 = vor.u32 %v2752_v15, %v2583_v20  ;;  %v2575_v4 = vld [vmem:[%s3699_s5 + $0x60] sm:$0xf]  ;;  %v2569_v51 = vld [vmem:[%s3699_s5 + $0x58] sm:$0xf0] }
 0x1d4   : > { %v1351_v34 = vpack.c.bf16 %v1323_v7, %v3707_v27  ;;  %v1350_v47 = vpack.c.bf16 %v1320_v23, %v3708_v22  ;;  %v2648_v58 = vor.u32 %v2768_v53, %v2647_v25  ;;  %v2580_v21 = vor.u32 %v2749_v8, %v2577_v9  ;;  %v2766_v59 = vld [vmem:[%s3699_s5 + $0xe4] sm:$0xf0]  ;;  %v2763_v52 = vld [vmem:[%s3699_s5 + $0xd4] sm:$0xf]  ;;  %v2633_v0 = vld [vmem:[%s3699_s5 + $0xd8] sm:$0xf0] }
 0x1d5   : > { %1448 = vmatpush.bf16.msra.mxu0 %v1357_v17  ;;  %1610 = vmatpush.bf16.msra.mxu2 %v1357_v17  ;;  %v1349_v44 = vpack.c.bf16 %v1319_v5, %v3709_v6  ;;  %v2644_v2 = vor.u32 %v2765_v19, %v2641_v32  ;;  %v2576_v10 = vor.u32 %v2750_v11, %v2575_v4  ;;  %v2731_v17 = vld [vmem:[%s3698_s4 + $0x10] sm:$0xff]  ;;  %v2764_v61 = vld [vmem:[%s3699_s5 + $0xd4] sm:$0xf0]  ;;  %v2745_v56 = vld [vmem:[%s3699_s5 + $0x44] sm:$0xf] }
 0x1d6   : > { %v2640_v3 = vor.u32 %v2766_v59, %v2639_v13  ;;  %v2572_v62 = vor.u32 %v2747_v36, %v2569_v51  ;;  %v2567_v50 = vld [vmem:[%s3699_s5 + $0x50] sm:$0xf]  ;;  %v2636_v60 = vor.u32 %v2763_v52, %v2633_v0  ;;  %v2732_v24 = vld [vmem:[%s3698_s4 + $0x18] sm:$0xff]  ;;  %v2561_v54 = vld [vmem:[%s3699_s5 + $0x48] sm:$0xf0] }
 0x1d7   : > { %1498 = vmatpush.bf16.msra.mxu1 %v1356_v49  ;;  %1660 = vmatpush.bf16.msra.mxu3 %v1356_v49  ;;  %v2748_v49 = vld [vmem:[%s3699_s5 + $0x54] sm:$0xf0]  ;;  %v2631_v1 = vld [vmem:[%s3699_s5 + $0xd0] sm:$0xf]  ;;  %v2761_v57 = vld [vmem:[%s3699_s5 + $0xc4] sm:$0xf]  ;;  %v2564_v38 = vor.u32 %v2745_v56, %v2561_v54 }
 0x1d8   : > { %v2568_v18 = vor.u32 %v2748_v49, %v2567_v50  ;;  %v2632_v16 = vor.u32 %v2764_v61, %v2631_v1  ;;  %v2559_v43 = vld [vmem:[%s3699_s5 + $0x40] sm:$0xf]  ;;  %v2746_v29 = vld [vmem:[%s3699_s5 + $0x44] sm:$0xf0]  ;;  %v2553_v5 = vld [vmem:[%s3699_s5 + $0x38] sm:$0xf0] }
 0x1d9   : > { %1449 = vmatpush.bf16.msra.mxu0 %v1355_v33  ;;  %1611 = vmatpush.bf16.msra.mxu2 %v1355_v33  ;;  %v2724_v33 = vld [vmem:[%s3697_s3 + $0x18] sm:$0xff]  ;;  %v2623_v7 = vld [vmem:[%s3699_s5 + $0xc0] sm:$0xf]  ;;  %v2762_v26 = vld [vmem:[%s3699_s5 + $0xc4] sm:$0xf0] }
 0x1da   : > { %v2624_v23 = vor.u32 %v2762_v26, %v2623_v7  ;;  %v2733_v27 = vld [vmem:[%s3698_s4 + $0x20] sm:$0xff]  ;;  %v2759_v22 = vld [vmem:[%s3699_s5 + $0xb4] sm:$0xf]  ;;  %v2744_v6 = vld [vmem:[%s3699_s5 + $0x34] sm:$0xf0] }
 0x1db   : > { %1499 = vmatpush.bf16.msra.mxu1 %v1354_v41  ;;  %1661 = vmatpush.bf16.msra.mxu3 %v1354_v41  ;;  %v2625_v41 = vld [vmem:[%s3699_s5 + $0xc8] sm:$0xf0]  ;;  %v2615_v45 = vld [vmem:[%s3699_s5 + $0xb0] sm:$0xf]  ;;  %v2760_v63 = vld [vmem:[%s3699_s5 + $0xb4] sm:$0xf0] }
 0x1dc   : > { %v2628_v30 = vor.u32 %v2761_v57, %v2625_v41  ;;  %v2726_v39 = vld [vmem:[%s3697_s3 + $0x28] sm:$0xff]  ;;  %v2741_v15 = vld [vmem:[%s3699_s5 + $0x24] sm:$0xf]  ;;  %v2607_v9 = vld [vmem:[%s3699_s5 + $0xa0] sm:$0xf] }
 0x1dd   : > { %1450 = vmatpush.bf16.msra.mxu0 %v1353_v55  ;;  %1612 = vmatpush.bf16.msra.mxu2 %v1353_v55  ;;  %v2560_v55 = vor.u32 %v2746_v29, %v2559_v43  ;;  %v2734_v20 = vld [vmem:[%s3698_s4 + $0x28] sm:$0xff]  ;;  %v2537_v4 = vld [vmem:[%s3699_s5 + $0x18] sm:$0xf0]  ;;  %v2755_v11 = vld [vmem:[%s3699_s5 + $0x94] sm:$0xf] }
 0x1de   : > { %v2609_v53 = vld [vmem:[%s3699_s5 + $0xa8] sm:$0xf0]  ;;  %v2758_v19 = vld [vmem:[%s3699_s5 + $0xa4] sm:$0xf0]  ;;  %v2727_v59 = vld [vmem:[%s3697_s3 + $0x30] sm:$0xff] }
 0x1df   : > { %1500 = vmatpush.bf16.msra.mxu1 %v1352_v46  ;;  %1662 = vmatpush.bf16.msra.mxu3 %v1352_v46  ;;  %v2725_v46 = vld [vmem:[%s3697_s3 + $0x20] sm:$0xff]  ;;  %v2608_v32 = vor.u32 %v2758_v19, %v2607_v9  ;;  %v2599_v36 = vld [vmem:[%s3699_s5 + $0x90] sm:$0xf]  ;;  %v2756_v52 = vld [vmem:[%s3699_s5 + $0x94] sm:$0xf0] }
 0x1e0   : > { %v2591_v0 = vld [vmem:[%s3699_s5 + $0x80] sm:$0xf]  ;;  %v2754_v50 = vld [vmem:[%s3699_s5 + $0x84] sm:$0xf0]  ;;  %v2753_v49 = vld [vmem:[%s3699_s5 + $0x84] sm:$0xf] }
 0x1e1   : > { %1451 = vmatpush.bf16.msra.mxu0 %v1351_v34  ;;  %1613 = vmatpush.bf16.msra.mxu2 %v1351_v34  ;;  %v2743_v34 = vld [vmem:[%s3699_s5 + $0x34] sm:$0xf]  ;;  %v2592_v1 = vor.u32 %v2754_v50, %v2591_v0  ;;  %v2593_v61 = vld [vmem:[%s3699_s5 + $0x88] sm:$0xf0] }
 0x1e2   : > { %v2596_v56 = vor.u32 %v2753_v49, %v2593_v61  ;;  %v2529_v57 = vld [vmem:[%s3699_s5 + $0x8] sm:$0xf0] }
 0x1e3   : > { %1501 = vmatpush.bf16.msra.mxu1 %v1350_v47  ;;  %1663 = vmatpush.bf16.msra.mxu3 %v1350_v47  ;;  %v2556_v47 = vor.u32 %v2743_v34, %v2553_v5 }
 0x1e5   : > { %1452 = vmatpush.bf16.msra.mxu0 %v1349_v44  ;;  %1614 = vmatpush.bf16.msra.mxu2 %v1349_v44 }
 0x1e6   : > { %1664 = vmatmul.bf16.vlgmr.msra.gmra.mxu3 %v2721_v28  ;;  %1502 = vmatmul.bf16.vlgmr.msra.gmra.mxu1 %v2729_v40 }
 0x1e7   : > { %2060 = vmatpush.bf16.msrb.mxu3 %v2652_v42  ;;  %1962 = vmatpush.bf16.msrb.mxu1 %v2648_v58  ;;  %v2545_v42 = vld [vmem:[%s3699_s5 + $0x28] sm:$0xf0]  ;;  %v2543_v58 = vld [vmem:[%s3699_s5 + $0x20] sm:$0xf] }
 0x1e8   : > { %1615 = vmatmul.bf16.vlgmr.msra.gmra.mxu2 %v2721_v28  ;;  %1453 = vmatmul.bf16.vlgmr.msra.gmra.mxu0 %v2729_v40  ;;  %v2617_v28 = vld [vmem:[%s3699_s5 + $0xb8] sm:$0xf0]  ;;  %v2551_v40 = vld [vmem:[%s3699_s5 + $0x30] sm:$0xf]  ;;  %v2548_v25 = vor.u32 %v2741_v15, %v2545_v42 }
 0x1e9   : > { %2011 = vmatpush.bf16.msrb.mxu2 %v2588_v14  ;;  %1913 = vmatpush.bf16.msrb.mxu0 %v2584_v12  ;;  %v2620_v44 = vor.u32 %v2759_v22, %v2617_v28  ;;  %v2552_v48 = vor.u32 %v2744_v6, %v2551_v40  ;;  %v2616_v14 = vor.u32 %v2760_v63, %v2615_v45  ;;  %v2757_v12 = vld [vmem:[%s3699_s5 + $0xa4] sm:$0xf] }
 0x1eb   : > { %2061 = vmatpush.bf16.msrb.mxu3 %v2644_v2  ;;  %1963 = vmatpush.bf16.msrb.mxu1 %v2640_v3  ;;  %v2601_v2 = vld [vmem:[%s3699_s5 + $0x98] sm:$0xf0]  ;;  %v2735_v3 = vld [vmem:[%s3698_s4 + $0x30] sm:$0xff] }
 0x1ec   : > { %v2604_v13 = vor.u32 %v2755_v11, %v2601_v2 }
 0x1ed   : > { %2012 = vmatpush.bf16.msrb.mxu2 %v2580_v21  ;;  %1914 = vmatpush.bf16.msrb.mxu0 %v2576_v10  ;;  %v2739_v21 = vld [vmem:[%s3699_s5 + $0x14] sm:$0xf] }
 0x1ee   : > { %v2540_v10 = vor.u32 %v2739_v21, %v2537_v4 }
 0x1ef   : > { %2062 = vmatpush.bf16.msrb.mxu3 %v2636_v60  ;;  %1964 = vmatpush.bf16.msrb.mxu1 %v2632_v16  ;;  %v2728_v60 = vld [vmem:[%s3697_s3 + $0x38] sm:$0xff]  ;;  %v2527_v16 = vld [vmem:[%s3699_s5] sm:$0xf] }
 0x1f1   : > { %2013 = vmatpush.bf16.msrb.mxu2 %v2572_v62  ;;  %1915 = vmatpush.bf16.msrb.mxu0 %v2568_v18  ;;  %v2600_v62 = vor.u32 %v2756_v52, %v2599_v36  ;;  %v2736_v18 = vld [vmem:[%s3698_s4 + $0x38] sm:$0xff] }
 0x1f3   : > { %2063 = vmatpush.bf16.msrb.mxu3 %v2628_v30  ;;  %1965 = vmatpush.bf16.msrb.mxu1 %v2624_v23 }
 0x1f5   : > { %2014 = vmatpush.bf16.msrb.mxu2 %v2564_v38  ;;  %1916 = vmatpush.bf16.msrb.mxu0 %v2560_v55 }
 0x1f6   : > { %1669 = vmatmul.bf16.gmra.mxu3 %v2722_v37  ;;  %1507 = vmatmul.bf16.gmra.mxu1 %v2730_v31 }
 0x1f7   : > { %2064 = vmatpush.bf16.msrb.mxu3 %v2620_v44  ;;  %1966 = vmatpush.bf16.msrb.mxu1 %v2616_v14 }
 0x1f8   : > { %1620 = vmatmul.bf16.gmra.mxu2 %v2722_v37  ;;  %1458 = vmatmul.bf16.gmra.mxu0 %v2730_v31  ;;  %v2742_v37 = vld [vmem:[%s3699_s5 + $0x24] sm:$0xf0]  ;;  %v2612_v31 = vor.u32 %v2757_v12, %v2609_v53 }
 0x1f9   : > { %2015 = vmatpush.bf16.msrb.mxu2 %v2556_v47  ;;  %1917 = vmatpush.bf16.msrb.mxu0 %v2552_v48  ;;  %v2544_v8 = vor.u32 %v2742_v37, %v2543_v58 }
 0x1fb   : > { %2065 = vmatpush.bf16.msrb.mxu3 %v2612_v31  ;;  %1967 = vmatpush.bf16.msrb.mxu1 %v2608_v32 }
 0x1fd   : > { %2016 = vmatpush.bf16.msrb.mxu2 %v2548_v25  ;;  %1918 = vmatpush.bf16.msrb.mxu0 %v2544_v8 }
 0x1ff   : > { %2066 = vmatpush.bf16.msrb.mxu3 %v2604_v13  ;;  %1968 = vmatpush.bf16.msrb.mxu1 %v2600_v62 }
 0x201   : > { %2017 = vmatpush.bf16.msrb.mxu2 %v2540_v10 }
 0x203   : > { %1969 = vmatpush.bf16.msrb.mxu1 %v2592_v1  ;;  %2067 = vmatpush.bf16.msrb.mxu3 %v2596_v56 }
 0x206   : > { %1674 = vmatmul.bf16.gmra.mxu3 %v2723_v35  ;;  %1512 = vmatmul.bf16.gmra.mxu1 %v2731_v17 }
 0x208   : > { %1625 = vmatmul.bf16.gmra.mxu2 %v2723_v35  ;;  %1463 = vmatmul.bf16.gmra.mxu0 %v2731_v17  ;;  %v2535_v35 = vld [vmem:[%s3699_s5 + $0x10] sm:$0xf]  ;;  %v2740_v17 = vld [vmem:[%s3699_s5 + $0x14] sm:$0xf0] }
 0x209   : > { %v2536_v51 = vor.u32 %v2740_v17, %v2535_v35 }
 0x20b   : > { %1919 = vmatpush.bf16.msrb.mxu0 %v2536_v51 }
 0x216   : > { %1679 = vmatmul.bf16.gmra.mxu3 %v2724_v33  ;;  %1517 = vmatmul.bf16.gmra.mxu1 %v2732_v24 }
 0x218   : > { %1630 = vmatmul.bf16.gmra.mxu2 %v2724_v33  ;;  %1468 = vmatmul.bf16.gmra.mxu0 %v2732_v24  ;;  %v2738_v33 = vld [vmem:[%s3699_s5 + $0x4] sm:$0xf0]  ;;  %v2737_v24 = vld [vmem:[%s3699_s5 + $0x4] sm:$0xf] }
 0x219   : > { %v2528_v54 = vor.u32 %v2738_v33, %v2527_v16  ;;  %v2532_v38 = vor.u32 %v2737_v24, %v2529_v57 }
 0x21b   : > { %1920 = vmatpush.bf16.msrb.mxu0 %v2528_v54  ;;  %2018 = vmatpush.bf16.msrb.mxu2 %v2532_v38 }
 0x226   : > { %1684 = vmatmul.bf16.gmra.mxu3 %v2725_v46  ;;  %1522 = vmatmul.bf16.gmra.mxu1 %v2733_v27 }
 0x228   : > { %1635 = vmatmul.bf16.gmra.mxu2 %v2725_v46  ;;  %1473 = vmatmul.bf16.gmra.mxu0 %v2733_v27 }
 0x236   : > { %1689 = vmatmul.bf16.gmra.mxu3 %v2726_v39  ;;  %1527 = vmatmul.bf16.gmra.mxu1 %v2734_v20 }
 0x238   : > { %1640 = vmatmul.bf16.gmra.mxu2 %v2726_v39  ;;  %1478 = vmatmul.bf16.gmra.mxu0 %v2734_v20 }
 0x246   : > { %1694 = vmatmul.bf16.gmra.mxu3 %v2727_v59  ;;  %1532 = vmatmul.bf16.gmra.mxu1 %v2735_v3 }
 0x248   : > { %1645 = vmatmul.bf16.gmra.mxu2 %v2727_v59  ;;  %1483 = vmatmul.bf16.gmra.mxu0 %v2735_v3 }
 0x256   : > { %1699 = vmatmul.bf16.gmra.mxu3 %v2728_v60  ;;  %1537 = vmatmul.bf16.gmra.mxu1 %v2736_v18 }
 0x258   : > { %1650 = vmatmul.bf16.gmra.mxu2 %v2728_v60  ;;  %1488 = vmatmul.bf16.gmra.mxu0 %v2736_v18 }
 0x263   : > { %v1503_v41 = vpop.f32.mrf.mxu1 }
 0x264   : > { %v1543_v26 = vsub.f32 0.0, %v1503_v41 }
 0x265   : > { %v1454_v43 = vpop.f32.mrf.mxu0 }
 0x269   : > { %v1665_v29 = vpop.f32.mrf.mxu3 }
 0x26a   : > { %v1666_v46 = vadd.f32 %v1665_v29, %v1454_v43 }
 0x26b   : > { %v1616_v30 = vpop.f32.mrf.mxu2  ;;  %v1505_v55 = vpop.f32.mrf.mxu1 }
 0x26c   : > { %v1544_v27 = vsub.f32 0.0, %v1505_v55  ;;  %v1617_v47 = vadd.f32 %v1616_v30, %v1543_v26 }
 0x26d   : > { %v1456_v7 = vpop.f32.mrf.mxu0 }
 0x271   : > { %v1667_v23 = vpop.f32.mrf.mxu3 }
 0x272   : > { %v1668_v34 = vadd.f32 %v1667_v23, %v1456_v7 }
 0x273   : > { %v1618_v5 = vpop.f32.mrf.mxu2  ;;  %v1508_v22 = vpop.f32.mrf.mxu1 }
 0x274   : > { %v1619_v28 = vadd.f32 %v1618_v5, %v1544_v27  ;;  %v1706_v40 = vpack.c.bf16 %v1668_v34, %v1666_v46  ;;  %v1545_v39 = vsub.f32 0.0, %v1508_v22 }
 0x275   : > { %v1459_v6 = vpop.f32.mrf.mxu0 }
 0x276   : > { %v1705_v44 = vpack.c.bf16 %v1619_v28, %v1617_v47  ;;  %1970 = vmatmul.bf16.vlgmr.msrb.gmra.mxu1 %v1706_v40  ;;  %2068 = vmatmul.bf16.vlgmr.msrb.gmra.mxu3 %v1706_v40 }
 0x278   : > { %1921 = vmatmul.bf16.vlgmr.msrb.gmra.mxu0 %v1705_v44  ;;  %2019 = vmatmul.bf16.vlgmr.msrb.gmra.mxu2 %v1705_v44 }
 0x279   : > { %v1670_v48 = vpop.f32.mrf.mxu3 }
 0x27a   : > { %v1671_v15 = vadd.f32 %v1670_v48, %v1459_v6 }
 0x27b   : > { %v1621_v45 = vpop.f32.mrf.mxu2  ;;  %v1510_v63 = vpop.f32.mrf.mxu1 }
 0x27c   : > { %v1546_v42 = vsub.f32 0.0, %v1510_v63  ;;  %v1622_v58 = vadd.f32 %v1621_v45, %v1545_v39 }
 0x27d   : > { %v1461_v14 = vpop.f32.mrf.mxu0 }
 0x281   : > { %v1672_v20 = vpop.f32.mrf.mxu3 }
 0x282   : > { %v1673_v12 = vadd.f32 %v1672_v20, %v1461_v14 }
 0x283   : > { %v1623_v25 = vpop.f32.mrf.mxu2  ;;  %v1513_v53 = vpop.f32.mrf.mxu1 }
 0x284   : > { %v1624_v37 = vadd.f32 %v1623_v25, %v1546_v42  ;;  %v1708_v31 = vpack.c.bf16 %v1673_v12, %v1671_v15  ;;  %v1547_v11 = vsub.f32 0.0, %v1513_v53 }
 0x285   : > { %v1464_v8 = vpop.f32.mrf.mxu0 }
 0x286   : > { %v1707_v9 = vpack.c.bf16 %v1624_v37, %v1622_v58  ;;  %1975 = vmatmul.bf16.gmra.mxu1 %v1708_v31  ;;  %2073 = vmatmul.bf16.gmra.mxu3 %v1708_v31 }
 0x288   : > { %1926 = vmatmul.bf16.gmra.mxu0 %v1707_v9  ;;  %2024 = vmatmul.bf16.gmra.mxu2 %v1707_v9 }
 0x289   : > { %v1675_v19 = vpop.f32.mrf.mxu3 }
 0x28a   : > { %v1676_v10 = vadd.f32 %v1675_v19, %v1464_v8 }
 0x28b   : > { %v1626_v21 = vpop.f32.mrf.mxu2  ;;  %v1515_v32 = vpop.f32.mrf.mxu1 }
 0x28c   : > { %v1548_v13 = vsub.f32 0.0, %v1515_v32  ;;  %v1627_v17 = vadd.f32 %v1626_v21, %v1547_v11 }
 0x28d   : > { %v1466_v4 = vpop.f32.mrf.mxu0 }
 0x291   : > { %v1677_v2 = vpop.f32.mrf.mxu3 }
 0x292   : > { %v1678_v59 = vadd.f32 %v1677_v2, %v1466_v4 }
 0x293   : > { %v1628_v3 = vpop.f32.mrf.mxu2  ;;  %v1518_v35 = vpop.f32.mrf.mxu1 }
 0x294   : > { %v1629_v36 = vadd.f32 %v1628_v3, %v1548_v13  ;;  %v1710_v51 = vpack.c.bf16 %v1678_v59, %v1676_v10  ;;  %v1549_v18 = vsub.f32 0.0, %v1518_v35 }
 0x295   : > { %v1469_v52 = vpop.f32.mrf.mxu0 }
 0x296   : > { %v1709_v62 = vpack.c.bf16 %v1629_v36, %v1627_v17  ;;  %1980 = vmatmul.bf16.gmra.mxu1 %v1710_v51  ;;  %2078 = vmatmul.bf16.gmra.mxu3 %v1710_v51 }
 0x298   : > { %1931 = vmatmul.bf16.gmra.mxu0 %v1709_v62  ;;  %2029 = vmatmul.bf16.gmra.mxu2 %v1709_v62 }
 0x299   : > { %v1680_v0 = vpop.f32.mrf.mxu3 }
 0x29a   : > { %v1681_v61 = vadd.f32 %v1680_v0, %v1469_v52 }
 0x29b   : > { %v1631_v50 = vpop.f32.mrf.mxu2  ;;  %v1520_v49 = vpop.f32.mrf.mxu1 }
 0x29c   : > { %v1550_v16 = vsub.f32 0.0, %v1520_v49  ;;  %v1632_v54 = vadd.f32 %v1631_v50, %v1549_v18 }
 0x29d   : > { %v1471_v60 = vpop.f32.mrf.mxu0 }
 0x2a1   : > { %v1682_v1 = vpop.f32.mrf.mxu3 }
 0x2a2   : > { %v1683_v33 = vadd.f32 %v1682_v1, %v1471_v60 }
 0x2a3   : > { %v1633_v24 = vpop.f32.mrf.mxu2  ;;  %v1523_v56 = vpop.f32.mrf.mxu1 }
 0x2a4   : > { %v1634_v57 = vadd.f32 %v1633_v24, %v1550_v16  ;;  %v1712_v38 = vpack.c.bf16 %v1683_v33, %v1681_v61  ;;  %v1551_v26 = vsub.f32 0.0, %v1523_v56 }
 0x2a5   : > { %v1474_v41 = vpop.f32.mrf.mxu0 }
 0x2a6   : > { %v1711_v43 = vpack.c.bf16 %v1634_v57, %v1632_v54  ;;  %1985 = vmatmul.bf16.gmra.mxu1 %v1712_v38  ;;  %2083 = vmatmul.bf16.gmra.mxu3 %v1712_v38 }
 0x2a8   : > { %1936 = vmatmul.bf16.gmra.mxu0 %v1711_v43  ;;  %2034 = vmatmul.bf16.gmra.mxu2 %v1711_v43 }
 0x2a9   : > { %v1685_v29 = vpop.f32.mrf.mxu3 }
 0x2aa   : > { %v1686_v46 = vadd.f32 %v1685_v29, %v1474_v41 }
 0x2ab   : > { %v1636_v30 = vpop.f32.mrf.mxu2  ;;  %v1525_v55 = vpop.f32.mrf.mxu1 }
 0x2ac   : > { %v1552_v27 = vsub.f32 0.0, %v1525_v55  ;;  %v1637_v47 = vadd.f32 %v1636_v30, %v1551_v26 }
 0x2ad   : > { %v1476_v7 = vpop.f32.mrf.mxu0 }
 0x2b1   : > { %v1687_v23 = vpop.f32.mrf.mxu3 }
 0x2b2   : > { %v1688_v34 = vadd.f32 %v1687_v23, %v1476_v7 }
 0x2b3   : > { %v1638_v5 = vpop.f32.mrf.mxu2  ;;  %v1528_v22 = vpop.f32.mrf.mxu1 }
 0x2b4   : > { %v1639_v28 = vadd.f32 %v1638_v5, %v1552_v27  ;;  %v1714_v40 = vpack.c.bf16 %v1688_v34, %v1686_v46  ;;  %v1553_v39 = vsub.f32 0.0, %v1528_v22 }
 0x2b5   : > { %v1479_v6 = vpop.f32.mrf.mxu0 }
 0x2b6   : > { %v1713_v44 = vpack.c.bf16 %v1639_v28, %v1637_v47  ;;  %1990 = vmatmul.bf16.gmra.mxu1 %v1714_v40  ;;  %2088 = vmatmul.bf16.gmra.mxu3 %v1714_v40 }
 0x2b8   : > { %1941 = vmatmul.bf16.gmra.mxu0 %v1713_v44  ;;  %2039 = vmatmul.bf16.gmra.mxu2 %v1713_v44 }
 0x2b9   : > { %v1690_v48 = vpop.f32.mrf.mxu3 }
 0x2ba   : > { %v1691_v15 = vadd.f32 %v1690_v48, %v1479_v6 }
 0x2bb   : > { %v1641_v45 = vpop.f32.mrf.mxu2  ;;  %v1530_v63 = vpop.f32.mrf.mxu1 }
 0x2bc   : > { %v1554_v42 = vsub.f32 0.0, %v1530_v63  ;;  %v1642_v58 = vadd.f32 %v1641_v45, %v1553_v39 }
 0x2bd   : > { %v1481_v14 = vpop.f32.mrf.mxu0 }
 0x2c1   : > { %v1692_v20 = vpop.f32.mrf.mxu3 }
 0x2c2   : > { %v1693_v12 = vadd.f32 %v1692_v20, %v1481_v14 }
 0x2c3   : > { %v1643_v25 = vpop.f32.mrf.mxu2  ;;  %v1533_v53 = vpop.f32.mrf.mxu1 }
 0x2c4   : > { %v1644_v37 = vadd.f32 %v1643_v25, %v1554_v42  ;;  %v1716_v31 = vpack.c.bf16 %v1693_v12, %v1691_v15  ;;  %v1555_v11 = vsub.f32 0.0, %v1533_v53 }
 0x2c5   : > { %v1484_v8 = vpop.f32.mrf.mxu0 }
 0x2c6   : > { %v1715_v9 = vpack.c.bf16 %v1644_v37, %v1642_v58  ;;  %1995 = vmatmul.bf16.gmra.mxu1 %v1716_v31  ;;  %2093 = vmatmul.bf16.gmra.mxu3 %v1716_v31 }
 0x2c8   : > { %1946 = vmatmul.bf16.gmra.mxu0 %v1715_v9  ;;  %2044 = vmatmul.bf16.gmra.mxu2 %v1715_v9 }
 0x2c9   : > { %v1695_v19 = vpop.f32.mrf.mxu3 }
 0x2ca   : > { %v1696_v10 = vadd.f32 %v1695_v19, %v1484_v8 }
 0x2cb   : > { %v1646_v21 = vpop.f32.mrf.mxu2  ;;  %v1535_v32 = vpop.f32.mrf.mxu1 }
 0x2cc   : > { %v1556_v13 = vsub.f32 0.0, %v1535_v32  ;;  %v1647_v35 = vadd.f32 %v1646_v21, %v1555_v11 }
 0x2cd   : > { %v1486_v4 = vpop.f32.mrf.mxu0 }
 0x2d1   : > { %v1697_v2 = vpop.f32.mrf.mxu3 }
 0x2d2   : > { %v1698_v59 = vadd.f32 %v1697_v2, %v1486_v4 }
 0x2d3   : > { %v1648_v3 = vpop.f32.mrf.mxu2  ;;  %v1538_v51 = vpop.f32.mrf.mxu1 }
 0x2d4   : > { %v1649_v17 = vadd.f32 %v1648_v3, %v1556_v13  ;;  %v1718_v36 = vpack.c.bf16 %v1698_v59, %v1696_v10  ;;  %v1557_v60 = vsub.f32 0.0, %v1538_v51 }
 0x2d5   : > { %v1489_v62 = vpop.f32.mrf.mxu0 }
 0x2d6   : > { %v1717_v52 = vpack.c.bf16 %v1649_v17, %v1647_v35  ;;  %2000 = vmatmul.bf16.gmra.mxu1 %v1718_v36  ;;  %2098 = vmatmul.bf16.gmra.mxu3 %v1718_v36 }
 0x2d8   : > { %1951 = vmatmul.bf16.gmra.mxu0 %v1717_v52  ;;  %2049 = vmatmul.bf16.gmra.mxu2 %v1717_v52 }
 0x2d9   : > { %v1700_v0 = vpop.f32.mrf.mxu3 }
 0x2da   : > { %v1701_v61 = vadd.f32 %v1700_v0, %v1489_v62 }
 0x2db   : > { %v1651_v50 = vpop.f32.mrf.mxu2  ;;  %v1540_v49 = vpop.f32.mrf.mxu1 }
 0x2dc   : > { %v1558_v16 = vsub.f32 0.0, %v1540_v49  ;;  %v1652_v56 = vadd.f32 %v1651_v50, %v1557_v60 }
 0x2dd   : > { %v1491_v18 = vpop.f32.mrf.mxu0 }
 0x2e1   : > { %v1702_v1 = vpop.f32.mrf.mxu3 }
 0x2e2   : > { %v1703_v33 = vadd.f32 %v1702_v1, %v1491_v18 }
 0x2e3   : > { %v1653_v24 = vpop.f32.mrf.mxu2 }
 0x2e4   : > { %v1654_v54 = vadd.f32 %v1653_v24, %v1558_v16  ;;  %v1720_v57 = vpack.c.bf16 %v1703_v33, %v1701_v61 }
 0x2e6   : > { %v1719_v38 = vpack.c.bf16 %v1654_v54, %v1652_v56  ;;  %2005 = vmatmul.bf16.gmra.mxu1 %v1720_v57  ;;  %2103 = vmatmul.bf16.gmra.mxu3 %v1720_v57 }
 0x2e8   : > { %1956 = vmatmul.bf16.gmra.mxu0 %v1719_v38  ;;  %2054 = vmatmul.bf16.gmra.mxu2 %v1719_v38 }
 0x2f3   : > { %v1971_v41 = vpop.f32.mrf.mxu1 }
 0x2f5   : > { %v1922_v43 = vpop.f32.mrf.mxu0 }
 0x2f6   : > { %v1972_v29 = vadd.f32 %v1971_v41, %v1922_v43 }
 0x2f8   : > { %2109 = vst [vmem:[%s3657_s29] sm:$0xff] %v1972_v29 }
 0x2f9   : > { %v2069_v30 = vpop.f32.mrf.mxu3 }
 0x2fb   : > { %v2020_v55 = vpop.f32.mrf.mxu2  ;;  %v1973_v7 = vpop.f32.mrf.mxu1 }
 0x2fc   : > { %v2070_v26 = vadd.f32 %v2069_v30, %v2020_v55 }
 0x2fd   : > { %v1924_v23 = vpop.f32.mrf.mxu0 }
 0x2fe   : > { %2110 = vst [vmem:[%s3657_s29 + $0x8] sm:$0xff] %v2070_v26  ;;  %v1974_v46 = vadd.f32 %v1973_v7, %v1924_v23 }
 0x300   : > { %2111 = vst [vmem:[%s3657_s29 + $0x10] sm:$0xff] %v1974_v46 }
 0x301   : > { %v2071_v27 = vpop.f32.mrf.mxu3 }
 0x303   : > { %v2022_v34 = vpop.f32.mrf.mxu2  ;;  %v1976_v5 = vpop.f32.mrf.mxu1 }
 0x304   : > { %v2072_v22 = vadd.f32 %v2071_v27, %v2022_v34 }
 0x305   : > { %v1927_v47 = vpop.f32.mrf.mxu0 }
 0x306   : > { %2112 = vst [vmem:[%s3657_s29 + $0x18] sm:$0xff] %v2072_v22  ;;  %v1977_v28 = vadd.f32 %v1976_v5, %v1927_v47 }
 0x308   : > { %2113 = vst [vmem:[%s3657_s29 + $0x20] sm:$0xff] %v1977_v28 }
 0x309   : > { %v2074_v40 = vpop.f32.mrf.mxu3 }
 0x30b   : > { %v2025_v6 = vpop.f32.mrf.mxu2  ;;  %v1978_v44 = vpop.f32.mrf.mxu1 }
 0x30c   : > { %v2075_v48 = vadd.f32 %v2074_v40, %v2025_v6 }
 0x30d   : > { %v1929_v45 = vpop.f32.mrf.mxu0 }
 0x30e   : > { %2114 = vst [vmem:[%s3657_s29 + $0x28] sm:$0xff] %v2075_v48  ;;  %v1979_v63 = vadd.f32 %v1978_v44, %v1929_v45 }
 0x310   : > { %2115 = vst [vmem:[%s3657_s29 + $0x30] sm:$0xff] %v1979_v63 }
 0x311   : > { %v2076_v14 = vpop.f32.mrf.mxu3 }
 0x313   : > { %v2027_v39 = vpop.f32.mrf.mxu2  ;;  %v1981_v20 = vpop.f32.mrf.mxu1 }
 0x314   : > { %v2077_v15 = vadd.f32 %v2076_v14, %v2027_v39 }
 0x315   : > { %v1932_v42 = vpop.f32.mrf.mxu0 }
 0x316   : > { %2116 = vst [vmem:[%s3657_s29 + $0x38] sm:$0xff] %v2077_v15  ;;  %v1982_v12 = vadd.f32 %v1981_v20, %v1932_v42 }
 0x318   : > { %2117 = vst [vmem:[%s3657_s29 + $0x40] sm:$0xff] %v1982_v12 }
 0x319   : > { %v2079_v25 = vpop.f32.mrf.mxu3 }
 0x31b   : > { %v2030_v53 = vpop.f32.mrf.mxu2  ;;  %v1983_v58 = vpop.f32.mrf.mxu1 }
 0x31c   : > { %v2080_v37 = vadd.f32 %v2079_v25, %v2030_v53 }
 0x31d   : > { %v1934_v31 = vpop.f32.mrf.mxu0 }
 0x31e   : > { %2118 = vst [vmem:[%s3657_s29 + $0x48] sm:$0xff] %v2080_v37  ;;  %v1984_v8 = vadd.f32 %v1983_v58, %v1934_v31 }
 0x320   : > { %2119 = vst [vmem:[%s3657_s29 + $0x50] sm:$0xff] %v1984_v8 }
 0x321   : > { %v2081_v9 = vpop.f32.mrf.mxu3 }
 0x323   : > { %v2032_v19 = vpop.f32.mrf.mxu2  ;;  %v1986_v21 = vpop.f32.mrf.mxu1 }
 0x324   : > { %v2082_v32 = vadd.f32 %v2081_v9, %v2032_v19 }
 0x325   : > { %v1937_v4 = vpop.f32.mrf.mxu0 }
 0x326   : > { %2120 = vst [vmem:[%s3657_s29 + $0x58] sm:$0xff] %v2082_v32  ;;  %v1987_v11 = vadd.f32 %v1986_v21, %v1937_v4 }
 0x328   : > { %2121 = vst [vmem:[%s3657_s29 + $0x60] sm:$0xff] %v1987_v11 }
 0x329   : > { %v2084_v2 = vpop.f32.mrf.mxu3 }
 0x32b   : > { %v2035_v10 = vpop.f32.mrf.mxu2  ;;  %v1988_v13 = vpop.f32.mrf.mxu1 }
 0x32c   : > { %v2085_v59 = vadd.f32 %v2084_v2, %v2035_v10 }
 0x32d   : > { %v1939_v3 = vpop.f32.mrf.mxu0 }
 0x32e   : > { %2122 = vst [vmem:[%s3657_s29 + $0x68] sm:$0xff] %v2085_v59  ;;  %v1989_v35 = vadd.f32 %v1988_v13, %v1939_v3 }
 0x330   : > { %2123 = vst [vmem:[%s3657_s29 + $0x70] sm:$0xff] %v1989_v35 }
 0x331   : > { %v2086_v17 = vpop.f32.mrf.mxu3 }
 0x333   : > { %v2037_v36 = vpop.f32.mrf.mxu2  ;;  %v1991_v51 = vpop.f32.mrf.mxu1 }
 0x334   : > { %v2087_v52 = vadd.f32 %v2086_v17, %v2037_v36 }
 0x335   : > { %v1942_v62 = vpop.f32.mrf.mxu0 }
 0x336   : > { %2124 = vst [vmem:[%s3657_s29 + $0x78] sm:$0xff] %v2087_v52  ;;  %v1992_v0 = vadd.f32 %v1991_v51, %v1942_v62 }
 0x338   : > { %2125 = vst [vmem:[%s3657_s29 + $0x80] sm:$0xff] %v1992_v0 }
 0x339   : > { %v2089_v50 = vpop.f32.mrf.mxu3 }
 0x33b   : > { %v2040_v49 = vpop.f32.mrf.mxu2  ;;  %v1993_v60 = vpop.f32.mrf.mxu1 }
 0x33c   : > { %v2090_v18 = vadd.f32 %v2089_v50, %v2040_v49 }
 0x33d   : > { %v1944_v1 = vpop.f32.mrf.mxu0 }
 0x33e   : > { %2126 = vst [vmem:[%s3657_s29 + $0x88] sm:$0xff] %v2090_v18  ;;  %v1994_v61 = vadd.f32 %v1993_v60, %v1944_v1 }
 0x340   : > { %2127 = vst [vmem:[%s3657_s29 + $0x90] sm:$0xff] %v1994_v61 }
 0x341   : > { %v2091_v16 = vpop.f32.mrf.mxu3 }
 0x343   : > { %v2042_v33 = vpop.f32.mrf.mxu2  ;;  %v1996_v24 = vpop.f32.mrf.mxu1 }
 0x344   : > { %v2092_v56 = vadd.f32 %v2091_v16, %v2042_v33 }
 0x345   : > { %v1947_v54 = vpop.f32.mrf.mxu0 }
 0x346   : > { %2128 = vst [vmem:[%s3657_s29 + $0x98] sm:$0xff] %v2092_v56  ;;  %v1997_v57 = vadd.f32 %v1996_v24, %v1947_v54 }
 0x348   : > { %2129 = vst [vmem:[%s3657_s29 + $0xa0] sm:$0xff] %v1997_v57 }
 0x349   : > { %v2094_v38 = vpop.f32.mrf.mxu3 }
 0x34b   : > { %v2045_v41 = vpop.f32.mrf.mxu2  ;;  %v1998_v43 = vpop.f32.mrf.mxu1 }
 0x34c   : > { %v2095_v29 = vadd.f32 %v2094_v38, %v2045_v41 }
 0x34d   : > { %v1949_v30 = vpop.f32.mrf.mxu0 }
 0x34e   : > { %2130 = vst [vmem:[%s3657_s29 + $0xa8] sm:$0xff] %v2095_v29  ;;  %v1999_v55 = vadd.f32 %v1998_v43, %v1949_v30 }
 0x350   : > { %2131 = vst [vmem:[%s3657_s29 + $0xb0] sm:$0xff] %v1999_v55 }
 0x351   : > { %v2096_v7 = vpop.f32.mrf.mxu3 }
 0x353   : > { %v2047_v26 = vpop.f32.mrf.mxu2  ;;  %v2001_v23 = vpop.f32.mrf.mxu1 }
 0x354   : > { %v2097_v46 = vadd.f32 %v2096_v7, %v2047_v26 }
 0x355   : > { %v1952_v27 = vpop.f32.mrf.mxu0 }
 0x356   : > { %2132 = vst [vmem:[%s3657_s29 + $0xb8] sm:$0xff] %v2097_v46  ;;  %v2002_v34 = vadd.f32 %v2001_v23, %v1952_v27 }
 0x358   : > { %2133 = vst [vmem:[%s3657_s29 + $0xc0] sm:$0xff] %v2002_v34 }
 0x359   : > { %v2099_v5 = vpop.f32.mrf.mxu3 }
 0x35b   : > { %v2050_v22 = vpop.f32.mrf.mxu2  ;;  %v2003_v47 = vpop.f32.mrf.mxu1 }
 0x35c   : > { %v2100_v28 = vadd.f32 %v2099_v5, %v2050_v22 }
 0x35d   : > { %v1954_v40 = vpop.f32.mrf.mxu0 }
 0x35e   : > { %2134 = vst [vmem:[%s3657_s29 + $0xc8] sm:$0xff] %v2100_v28  ;;  %v2004_v6 = vadd.f32 %v2003_v47, %v1954_v40 }
 0x360   : > { %2135 = vst [vmem:[%s3657_s29 + $0xd0] sm:$0xff] %v2004_v6 }
 0x361   : > { %v2101_v44 = vpop.f32.mrf.mxu3 }
 0x363   : > { %v2052_v48 = vpop.f32.mrf.mxu2  ;;  %v2006_v45 = vpop.f32.mrf.mxu1 }
 0x364   : > { %v2102_v63 = vadd.f32 %v2101_v44, %v2052_v48 }
 0x365   : > { %v1957_v14 = vpop.f32.mrf.mxu0 }
 0x366   : > { %2136 = vst [vmem:[%s3657_s29 + $0xd8] sm:$0xff] %v2102_v63  ;;  %v2007_v39 = vadd.f32 %v2006_v45, %v1957_v14 }
 0x368   : > { %2137 = vst [vmem:[%s3657_s29 + $0xe0] sm:$0xff] %v2007_v39 }
 0x369   : > { %v2104_v20 = vpop.f32.mrf.mxu3 }
 0x36b   : > { %v2055_v15 = vpop.f32.mrf.mxu2  ;;  %v2008_v25 = vpop.f32.mrf.mxu1 }
 0x36c   : > { %v2105_v42 = vadd.f32 %v2104_v20, %v2055_v15 }
 0x36d   : > { %v1959_v12 = vpop.f32.mrf.mxu0 }
 0x36e   : > { %2138 = vst [vmem:[%s3657_s29 + $0xe8] sm:$0xff] %v2105_v42  ;;  %v2009_v53 = vadd.f32 %v2008_v25, %v1959_v12 }
 0x370   : > { %2139 = vst [vmem:[%s3657_s29 + $0xf0] sm:$0xff] %v2009_v53 }
 0x371   : > { %v2106_v37 = vpop.f32.mrf.mxu3 }
 0x373   : > { %v2057_v58 = vpop.f32.mrf.mxu2 }
 0x374   : > { %v2107_v31 = vadd.f32 %v2106_v37, %v2057_v58 }
 0x376   : > { %2140 = vst [vmem:[%s3657_s29 + $0xf8] sm:$0xff] %v2107_v31 }
 0x377 PF: > { %s19_s30 = sadd.s32 1, %s2783_s30  }
 0x378   : > { %p16_p4 = scmp.ge.s32.totalorder %s19_s30, 6  }
 0x37a   :  { %18 = sbr.rel (!%p16_p4) target bundleno = 1 (0x1), region = 86 }

</bundles_post_ra>
